<compile_context>
chip_gen: v7x
topology: tpu7x:2x2x1
jax: 0.10.0
libtpu: 0.0.40
codegen_flags: <defaults>
</compile_context>

<pallas_src>
import jax
import jax.numpy as jnp
from jax.experimental import pallas as pl
from jax.experimental.pallas import tpu as pltpu

# ---- model dimensions (small, deterministic synthetic config) ----
V_IN = 16     # encoder (source) vocab
V_OUT = 16    # decoder (target) vocab  == decoder.output_dim
EMB = 32      # embedding dim
HID = 32      # LSTM hidden dim
SRC_LEN = 8
TGT_LEN = 8
BATCH = 2
B_PAD = 8     # pad batch to the 8-sublane floor
LANE = 128    # lane width; note 4*HID == LANE for this config
NEG = -1.0e30  # logit pad value (never wins argmax, stays finite)


def seq2seq_kernel(tf_ref,          # SMEM (T,) int32 teacher-force mask
                   enc_gx_ref,      # VMEM (S, B, 4H) f32: src x-projections, bias folded, gates [i,f,o,g]
                   enc_whh_ref,     # VMEM (H, 4H) bf16: encoder recurrent weights
                   tgt_gx_ref,      # VMEM (T, B, 4H) f32: teacher-forced x-projections, bias folded
                   wx_ref,          # VMEM (128, 4H) bf16: rows 0..Vout-1 = Wx_dec + dec_b, rest 0
                   dec_hw_ref,      # VMEM (H, 128 + 4H) bf16: [fc_w | 0-pad | Whh_dec]
                   fcb_ref,         # VMEM (1, 128) f32: fc bias, pad lanes = NEG
                   out_ref):        # VMEM (T, B, 128) f32: lane-padded logits
    S, B, _ = enc_gx_ref.shape
    T = out_ref.shape[0]

    # outputs[0] is never written by the decode loop -> zero exactly that row once.
    out_ref[0] = jnp.zeros((B, LANE), out_ref.dtype)

    # Loop-invariant reads / broadcasts hoisted out of the recurrences.
    enc_whh = enc_whh_ref[...]
    dec_hw = dec_hw_ref[...]
    wx = wx_ref[...]
    fcb = jnp.broadcast_to(fcb_ref[...], (B, LANE))
    idx = jax.lax.broadcasted_iota(jnp.int32, (B, LANE), 1)

    def gate_math(gates, c):
        # Gate order [i, f, o, g]: one contiguous sigmoid slab + one tanh slab.
        # Elementwise math stays f32 (v5e has no bf16 VPU/EUP path).
        sig = jax.nn.sigmoid(gates[:, :3 * HID])        # (B, 3H)
        g = jnp.tanh(gates[:, 3 * HID:])                # (B, H)
        i = sig[:, :HID]
        f = sig[:, HID:2 * HID]
        o = sig[:, 2 * HID:3 * HID]
        c_new = f * c + i * g
        h_new = o * jnp.tanh(c_new)
        return h_new, c_new

    # ---------------- encoder (fully unrolled; S small & static) ----------------
    # h0 = c0 = 0, so step 0 needs no recurrent matmul at all.
    h, c = gate_math(enc_gx_ref[0], jnp.zeros((B, HID), jnp.float32))
    for t in range(1, S):
        gates = enc_gx_ref[t] + jnp.dot(h.astype(jnp.bfloat16), enc_whh,
                                        preferred_element_type=jnp.float32)
        h, c = gate_math(gates, c)

    # ---------------- decoder (fully unrolled) ----------------
    # x for step 1 is target[0] unconditionally; its projection (+bias) is precomputed.
    gx = tgt_gx_ref[0]
    # One fused matmul on h: cols [:128] -> lane-padded logits, cols [128:] -> gate h-contrib.
    hW = jnp.dot(h.astype(jnp.bfloat16), dec_hw, preferred_element_type=jnp.float32)
    for t in range(1, T):
        gates = gx + hW[:, LANE:]                       # no per-step bias add (folded)
        h, c = gate_math(gates, c)

        # Single MXU push gives this step's logits AND next step's recurrent contribution.
        hW = jnp.dot(h.astype(jnp.bfloat16), dec_hw, preferred_element_type=jnp.float32)
        logits = hW[:, :LANE] + fcb                     # (B, 128); pad lanes ~ NEG
        out_ref[t] = logits                             # full-lane unmasked store

        if t < T - 1:
            # best_guess = argmax(logits) (first max on ties); pads can never win.
            maxv = jnp.max(logits, axis=1, keepdims=True)
            best = jnp.min(jnp.where(logits == maxv, idx, LANE), axis=1, keepdims=True)
            best_oh = (idx == best).astype(jnp.bfloat16)        # (B, 128) one-hot
            gx_free = jnp.dot(best_oh, wx, preferred_element_type=jnp.float32)
            # x-contribution for the next step: teacher-forced vs free-running.
            gx = jnp.where(tf_ref[t] > 0, tgt_gx_ref[t], gx_free)


def _perm_gates(w, axis):
    """Reorder PyTorch LSTM gate blocks [i, f, g, o] -> [i, f, o, g] along `axis`."""
    i, f, g, o = jnp.split(w, 4, axis=axis)
    return jnp.concatenate([i, f, o, g], axis=axis)


@jax.jit
def seq2seq_forward(source, target, tf_mask, params):
    """source: (S, B) int32, target: (T, B) int32, tf_mask: (T,) int32."""
    src_oh = jax.nn.one_hot(source, V_IN, dtype=jnp.float32)     # (S, B, V_IN)
    tgt_oh = jax.nn.one_hot(target, V_OUT, dtype=jnp.float32)    # (T, B, V_OUT)
    pad = B_PAD - BATCH
    src_oh = jnp.pad(src_oh, ((0, 0), (0, pad), (0, 0)))
    tgt_oh = jnp.pad(tgt_oh, ((0, 0), (0, pad), (0, 0)))

    # ---- encoder: fold embedding into W_ih, permute gates, precompute ALL S input
    #      projections (+bias) as one batched matmul on the host/XLA side.
    enc_wx = _perm_gates(params["enc_emb"] @ params["enc_wih"].T, 1)            # (V_IN, 4H)
    enc_b = _perm_gates((params["enc_bih"] + params["enc_bhh"])[None, :], 1)    # (1, 4H)
    enc_whh = _perm_gates(params["enc_whh"].T, 1).astype(jnp.bfloat16)          # (H, 4H)
    enc_gx = (src_oh.reshape(SRC_LEN * B_PAD, V_IN) @ enc_wx + enc_b
              ).reshape(SRC_LEN, B_PAD, 4 * HID)                                # f32

    # ---- decoder: fold embedding into W_ih, permute gates, fold the LSTM bias into the
    #      one-hot weight rows (exact because the selected input is a one-hot), precompute
    #      teacher-forced x-projections for all T steps, and fuse [fc_w | Whh_dec].
    dec_wx = _perm_gates(params["dec_emb"] @ params["dec_wih"].T, 1)            # (V_OUT, 4H)
    dec_b = _perm_gates((params["dec_bih"] + params["dec_bhh"])[None, :], 1)    # (1, 4H)
    dec_whh = _perm_gates(params["dec_whh"].T, 1)                               # (H, 4H)
    tgt_gx = (tgt_oh.reshape(TGT_LEN * B_PAD, V_OUT) @ dec_wx + dec_b
              ).reshape(TGT_LEN, B_PAD, 4 * HID)                                # f32
    wx_pad = jnp.zeros((LANE, 4 * HID), jnp.float32).at[:V_OUT].set(dec_wx + dec_b)
    wx_pad = wx_pad.astype(jnp.bfloat16)                                        # (128, 4H)
    fc_w = params["fc_w"].T                                                     # (H, V_OUT)
    dec_hw = jnp.concatenate(
        [fc_w, jnp.zeros((HID, LANE - V_OUT), jnp.float32), dec_whh], axis=1
    ).astype(jnp.bfloat16)                                                      # (H, 128+4H)
    fcb_pad = jnp.full((1, LANE), NEG, jnp.float32).at[0, :V_OUT].set(params["fc_b"])

    vmem = pl.BlockSpec(memory_space=pltpu.MemorySpace.VMEM)
    smem = pl.BlockSpec(memory_space=pltpu.MemorySpace.SMEM)

    out = pl.pallas_call(
        seq2seq_kernel,
        out_shape=jax.ShapeDtypeStruct((TGT_LEN, B_PAD, LANE), jnp.float32),
        in_specs=[smem] + [vmem] * 6,
        out_specs=vmem,
    )(tf_mask.astype(jnp.int32),
      enc_gx, enc_whh, tgt_gx, wx_pad, dec_hw, fcb_pad)
    return out[:, :BATCH, :V_OUT]


def init_params(key):
    k = 1.0 / (HID ** 0.5)
    ks = jax.random.split(key, 12)
    u = lambda kk, shape, s: jax.random.uniform(kk, shape, jnp.float32, -s, s)
    return {
        "enc_emb": u(ks[0], (V_IN, EMB), 0.1),
        "enc_wih": u(ks[1], (4 * HID, EMB), k),
        "enc_whh": u(ks[2], (4 * HID, HID), k),
        "enc_bih": u(ks[3], (4 * HID,), k),
        "enc_bhh": u(ks[4], (4 * HID,), k),
        "dec_emb": u(ks[5], (V_OUT, EMB), 0.1),
        "dec_wih": u(ks[6], (4 * HID, EMB), k),
        "dec_whh": u(ks[7], (4 * HID, HID), k),
        "dec_bih": u(ks[8], (4 * HID,), k),
        "dec_bhh": u(ks[9], (4 * HID,), k),
        "fc_w":    u(ks[10], (V_OUT, HID), k),
        "fc_b":    u(ks[11], (V_OUT,), k),
    }


if __name__ == "__main__":
    key = jax.random.PRNGKey(0)
    k_par, k_src, k_tgt, k_tf = jax.random.split(key, 4)

    params = init_params(k_par)
    source = jax.random.randint(k_src, (SRC_LEN, BATCH), 0, V_IN, dtype=jnp.int32)
    target = jax.random.randint(k_tgt, (TGT_LEN, BATCH), 0, V_OUT, dtype=jnp.int32)
    # deterministic stand-in for per-step random.random() < teacher_force_ratio (0.5)
    tf_mask = jax.random.bernoulli(k_tf, 0.5, (TGT_LEN,)).astype(jnp.int32)

    out = seq2seq_forward(source, target, tf_mask, params)
    out = jax.block_until_ready(out)

    assert out.shape == (TGT_LEN, BATCH, V_OUT), out.shape
    assert bool(jnp.all(jnp.isfinite(out)))
    assert bool(jnp.all(out[0] == 0.0))   # row 0 of `outputs` is never written
    print("KERNEL_OK")
</pallas_src>

<mosaic_0001>
module attributes {stable_mosaic.version = 11 : i64} {
  func.func @seq2seq_kernel(%arg0: memref<8xi32, #tpu.memory_space<smem>>, %arg1: memref<8x8x128xf32, #tpu.memory_space<vmem>>, %arg2: memref<32x128xbf16, #tpu.memory_space<vmem>>, %arg3: memref<8x8x128xf32, #tpu.memory_space<vmem>>, %arg4: memref<128x128xbf16, #tpu.memory_space<vmem>>, %arg5: memref<32x256xbf16, #tpu.memory_space<vmem>>, %arg6: memref<1x128xf32, #tpu.memory_space<vmem>>, %arg7: memref<8x8x128xf32, #tpu.memory_space<vmem>>) attributes {dimension_semantics = [], scalar_prefetch = 0 : i64, scratch_operands = 0 : i64, tpu.core_type = #tpu.core_type<tc>} {
    %cst = arith.constant 0.000000e+00 : f32
    %0 = vector.broadcast %cst : f32 to vector<8x128xf32>
    %c0 = arith.constant 0 : index
    %c0_0 = arith.constant 0 : index
    %c0_1 = arith.constant 0 : index
    %1 = vector.load %arg7[%c0, %c0_0, %c0_1] : memref<8x8x128xf32, #tpu.memory_space<vmem>>, vector<1x8x128xf32>
    %2 = vector.shape_cast %1 : vector<1x8x128xf32> to vector<8x128xf32>
    %3 = vector.shape_cast %0 : vector<8x128xf32> to vector<1x8x128xf32>
    tpu.vector_store %arg7[%c0, %c0_0, %c0_1], %3 {strides = array<i32>} : memref<8x8x128xf32, #tpu.memory_space<vmem>>, vector<1x8x128xf32>,
    %c0_2 = arith.constant 0 : index
    %c0_3 = arith.constant 0 : index
    %4 = vector.load %arg2[%c0_2, %c0_3] : memref<32x128xbf16, #tpu.memory_space<vmem>>, vector<32x128xbf16>
    %c0_4 = arith.constant 0 : index
    %c0_5 = arith.constant 0 : index
    %5 = vector.load %arg5[%c0_4, %c0_5] : memref<32x256xbf16, #tpu.memory_space<vmem>>, vector<32x256xbf16>
    %c0_6 = arith.constant 0 : index
    %c0_7 = arith.constant 0 : index
    %6 = vector.load %arg4[%c0_6, %c0_7] : memref<128x128xbf16, #tpu.memory_space<vmem>>, vector<128x128xbf16>
    %c0_8 = arith.constant 0 : index
    %c0_9 = arith.constant 0 : index
    %7 = vector.load %arg6[%c0_8, %c0_9] : memref<1x128xf32, #tpu.memory_space<vmem>>, vector<1x128xf32>
    %8 = vector.shape_cast %7 : vector<1x128xf32> to vector<1x128xf32>
    %9 = vector.broadcast %8 : vector<1x128xf32> to vector<8x128xf32>
    %10 = tpu.iota {dimensions = array<i32: 1>} : vector<8x128xi32>
    %c0_10 = arith.constant 0 : index
    %c0_11 = arith.constant 0 : index
    %c0_12 = arith.constant 0 : index
    %11 = vector.load %arg1[%c0_10, %c0_11, %c0_12] : memref<8x8x128xf32, #tpu.memory_space<vmem>>, vector<1x8x128xf32>
    %12 = vector.shape_cast %11 : vector<1x8x128xf32> to vector<8x128xf32>
    %cst_13 = arith.constant 0.000000e+00 : f32
    %13 = vector.broadcast %cst_13 : f32 to vector<8x32xf32>
    %14 = vector.extract_strided_slice %12 {offsets = [0, 0], sizes = [8, 96], strides = [1, 1]} : vector<8x128xf32> to vector<8x96xf32>
    %15 = arith.negf %14 : vector<8x96xf32>
    %16 = math.exp %15 : vector<8x96xf32>
    %cst_14 = arith.constant 1.000000e+00 : f32
    %17 = vector.broadcast %cst_14 : f32 to vector<8x96xf32>
    %18 = arith.addf %17, %16 : vector<8x96xf32>
    %19 = arith.divf %17, %18 : vector<8x96xf32>
    %20 = vector.extract_strided_slice %12 {offsets = [0, 96], sizes = [8, 32], strides = [1, 1]} : vector<8x128xf32> to vector<8x32xf32>
    %21 = math.tanh %20 : vector<8x32xf32>
    %22 = vector.extract_strided_slice %19 {offsets = [0, 0], sizes = [8, 32], strides = [1, 1]} : vector<8x96xf32> to vector<8x32xf32>
    %23 = vector.extract_strided_slice %19 {offsets = [0, 32], sizes = [8, 32], strides = [1, 1]} : vector<8x96xf32> to vector<8x32xf32>
    %24 = vector.extract_strided_slice %19 {offsets = [0, 64], sizes = [8, 32], strides = [1, 1]} : vector<8x96xf32> to vector<8x32xf32>
    %25 = arith.mulf %23, %13 : vector<8x32xf32>
    %26 = arith.mulf %22, %21 : vector<8x32xf32>
    %27 = arith.addf %25, %26 : vector<8x32xf32>
    %28 = math.tanh %27 : vector<8x32xf32>
    %29 = arith.mulf %24, %28 : vector<8x32xf32>
    %c1 = arith.constant 1 : index
    %c0_15 = arith.constant 0 : index
    %c0_16 = arith.constant 0 : index
    %30 = vector.load %arg1[%c1, %c0_15, %c0_16] : memref<8x8x128xf32, #tpu.memory_space<vmem>>, vector<1x8x128xf32>
    %31 = vector.shape_cast %30 : vector<1x8x128xf32> to vector<8x128xf32>
    %32 = arith.truncf %29 : vector<8x32xf32> to vector<8x32xbf16>
    %cst_17 = arith.constant dense<0.000000e+00> : vector<8x128xf32>
    %33 = tpu.matmul %32, %4, %cst_17 {dimension_numbers = #tpu.dot_dimension_numbers<[1], [0], [0], [1], [0, 0, 1, 1], [], []>} : vector<8x32xbf16>, vector<32x128xbf16>, vector<8x128xf32> -> vector<8x128xf32>
    %34 = arith.addf %31, %33 : vector<8x128xf32>
    %35 = vector.extract_strided_slice %34 {offsets = [0, 0], sizes = [8, 96], strides = [1, 1]} : vector<8x128xf32> to vector<8x96xf32>
    %36 = arith.negf %35 : vector<8x96xf32>
    %37 = math.exp %36 : vector<8x96xf32>
    %cst_18 = arith.constant 1.000000e+00 : f32
    %38 = vector.broadcast %cst_18 : f32 to vector<8x96xf32>
    %39 = arith.addf %38, %37 : vector<8x96xf32>
    %40 = arith.divf %38, %39 : vector<8x96xf32>
    %41 = vector.extract_strided_slice %34 {offsets = [0, 96], sizes = [8, 32], strides = [1, 1]} : vector<8x128xf32> to vector<8x32xf32>
    %42 = math.tanh %41 : vector<8x32xf32>
    %43 = vector.extract_strided_slice %40 {offsets = [0, 0], sizes = [8, 32], strides = [1, 1]} : vector<8x96xf32> to vector<8x32xf32>
    %44 = vector.extract_strided_slice %40 {offsets = [0, 32], sizes = [8, 32], strides = [1, 1]} : vector<8x96xf32> to vector<8x32xf32>
    %45 = vector.extract_strided_slice %40 {offsets = [0, 64], sizes = [8, 32], strides = [1, 1]} : vector<8x96xf32> to vector<8x32xf32>
    %46 = arith.mulf %44, %27 : vector<8x32xf32>
    %47 = arith.mulf %43, %42 : vector<8x32xf32>
    %48 = arith.addf %46, %47 : vector<8x32xf32>
    %49 = math.tanh %48 : vector<8x32xf32>
    %50 = arith.mulf %45, %49 : vector<8x32xf32>
    %c2 = arith.constant 2 : index
    %c0_19 = arith.constant 0 : index
    %c0_20 = arith.constant 0 : index
    %51 = vector.load %arg1[%c2, %c0_19, %c0_20] : memref<8x8x128xf32, #tpu.memory_space<vmem>>, vector<1x8x128xf32>
    %52 = vector.shape_cast %51 : vector<1x8x128xf32> to vector<8x128xf32>
    %53 = arith.truncf %50 : vector<8x32xf32> to vector<8x32xbf16>
    %cst_21 = arith.constant dense<0.000000e+00> : vector<8x128xf32>
    %54 = tpu.matmul %53, %4, %cst_21 {dimension_numbers = #tpu.dot_dimension_numbers<[1], [0], [0], [1], [0, 0, 1, 1], [], []>} : vector<8x32xbf16>, vector<32x128xbf16>, vector<8x128xf32> -> vector<8x128xf32>
    %55 = arith.addf %52, %54 : vector<8x128xf32>
    %56 = vector.extract_strided_slice %55 {offsets = [0, 0], sizes = [8, 96], strides = [1, 1]} : vector<8x128xf32> to vector<8x96xf32>
    %57 = arith.negf %56 : vector<8x96xf32>
    %58 = math.exp %57 : vector<8x96xf32>
    %cst_22 = arith.constant 1.000000e+00 : f32
    %59 = vector.broadcast %cst_22 : f32 to vector<8x96xf32>
    %60 = arith.addf %59, %58 : vector<8x96xf32>
    %61 = arith.divf %59, %60 : vector<8x96xf32>
    %62 = vector.extract_strided_slice %55 {offsets = [0, 96], sizes = [8, 32], strides = [1, 1]} : vector<8x128xf32> to vector<8x32xf32>
    %63 = math.tanh %62 : vector<8x32xf32>
    %64 = vector.extract_strided_slice %61 {offsets = [0, 0], sizes = [8, 32], strides = [1, 1]} : vector<8x96xf32> to vector<8x32xf32>
    %65 = vector.extract_strided_slice %61 {offsets = [0, 32], sizes = [8, 32], strides = [1, 1]} : vector<8x96xf32> to vector<8x32xf32>
    %66 = vector.extract_strided_slice %61 {offsets = [0, 64], sizes = [8, 32], strides = [1, 1]} : vector<8x96xf32> to vector<8x32xf32>
    %67 = arith.mulf %65, %48 : vector<8x32xf32>
    %68 = arith.mulf %64, %63 : vector<8x32xf32>
    %69 = arith.addf %67, %68 : vector<8x32xf32>
    %70 = math.tanh %69 : vector<8x32xf32>
    %71 = arith.mulf %66, %70 : vector<8x32xf32>
    %c3 = arith.constant 3 : index
    %c0_23 = arith.constant 0 : index
    %c0_24 = arith.constant 0 : index
    %72 = vector.load %arg1[%c3, %c0_23, %c0_24] : memref<8x8x128xf32, #tpu.memory_space<vmem>>, vector<1x8x128xf32>
    %73 = vector.shape_cast %72 : vector<1x8x128xf32> to vector<8x128xf32>
    %74 = arith.truncf %71 : vector<8x32xf32> to vector<8x32xbf16>
    %cst_25 = arith.constant dense<0.000000e+00> : vector<8x128xf32>
    %75 = tpu.matmul %74, %4, %cst_25 {dimension_numbers = #tpu.dot_dimension_numbers<[1], [0], [0], [1], [0, 0, 1, 1], [], []>} : vector<8x32xbf16>, vector<32x128xbf16>, vector<8x128xf32> -> vector<8x128xf32>
    %76 = arith.addf %73, %75 : vector<8x128xf32>
    %77 = vector.extract_strided_slice %76 {offsets = [0, 0], sizes = [8, 96], strides = [1, 1]} : vector<8x128xf32> to vector<8x96xf32>
    %78 = arith.negf %77 : vector<8x96xf32>
    %79 = math.exp %78 : vector<8x96xf32>
    %cst_26 = arith.constant 1.000000e+00 : f32
    %80 = vector.broadcast %cst_26 : f32 to vector<8x96xf32>
    %81 = arith.addf %80, %79 : vector<8x96xf32>
    %82 = arith.divf %80, %81 : vector<8x96xf32>
    %83 = vector.extract_strided_slice %76 {offsets = [0, 96], sizes = [8, 32], strides = [1, 1]} : vector<8x128xf32> to vector<8x32xf32>
    %84 = math.tanh %83 : vector<8x32xf32>
    %85 = vector.extract_strided_slice %82 {offsets = [0, 0], sizes = [8, 32], strides = [1, 1]} : vector<8x96xf32> to vector<8x32xf32>
    %86 = vector.extract_strided_slice %82 {offsets = [0, 32], sizes = [8, 32], strides = [1, 1]} : vector<8x96xf32> to vector<8x32xf32>
    %87 = vector.extract_strided_slice %82 {offsets = [0, 64], sizes = [8, 32], strides = [1, 1]} : vector<8x96xf32> to vector<8x32xf32>
    %88 = arith.mulf %86, %69 : vector<8x32xf32>
    %89 = arith.mulf %85, %84 : vector<8x32xf32>
    %90 = arith.addf %88, %89 : vector<8x32xf32>
    %91 = math.tanh %90 : vector<8x32xf32>
    %92 = arith.mulf %87, %91 : vector<8x32xf32>
    %c4 = arith.constant 4 : index
    %c0_27 = arith.constant 0 : index
    %c0_28 = arith.constant 0 : index
    %93 = vector.load %arg1[%c4, %c0_27, %c0_28] : memref<8x8x128xf32, #tpu.memory_space<vmem>>, vector<1x8x128xf32>
    %94 = vector.shape_cast %93 : vector<1x8x128xf32> to vector<8x128xf32>
    %95 = arith.truncf %92 : vector<8x32xf32> to vector<8x32xbf16>
    %cst_29 = arith.constant dense<0.000000e+00> : vector<8x128xf32>
    %96 = tpu.matmul %95, %4, %cst_29 {dimension_numbers = #tpu.dot_dimension_numbers<[1], [0], [0], [1], [0, 0, 1, 1], [], []>} : vector<8x32xbf16>, vector<32x128xbf16>, vector<8x128xf32> -> vector<8x128xf32>
    %97 = arith.addf %94, %96 : vector<8x128xf32>
    %98 = vector.extract_strided_slice %97 {offsets = [0, 0], sizes = [8, 96], strides = [1, 1]} : vector<8x128xf32> to vector<8x96xf32>
    %99 = arith.negf %98 : vector<8x96xf32>
    %100 = math.exp %99 : vector<8x96xf32>
    %cst_30 = arith.constant 1.000000e+00 : f32
    %101 = vector.broadcast %cst_30 : f32 to vector<8x96xf32>
    %102 = arith.addf %101, %100 : vector<8x96xf32>
    %103 = arith.divf %101, %102 : vector<8x96xf32>
    %104 = vector.extract_strided_slice %97 {offsets = [0, 96], sizes = [8, 32], strides = [1, 1]} : vector<8x128xf32> to vector<8x32xf32>
    %105 = math.tanh %104 : vector<8x32xf32>
    %106 = vector.extract_strided_slice %103 {offsets = [0, 0], sizes = [8, 32], strides = [1, 1]} : vector<8x96xf32> to vector<8x32xf32>
    %107 = vector.extract_strided_slice %103 {offsets = [0, 32], sizes = [8, 32], strides = [1, 1]} : vector<8x96xf32> to vector<8x32xf32>
    %108 = vector.extract_strided_slice %103 {offsets = [0, 64], sizes = [8, 32], strides = [1, 1]} : vector<8x96xf32> to vector<8x32xf32>
    %109 = arith.mulf %107, %90 : vector<8x32xf32>
    %110 = arith.mulf %106, %105 : vector<8x32xf32>
    %111 = arith.addf %109, %110 : vector<8x32xf32>
    %112 = math.tanh %111 : vector<8x32xf32>
    %113 = arith.mulf %108, %112 : vector<8x32xf32>
    %c5 = arith.constant 5 : index
    %c0_31 = arith.constant 0 : index
    %c0_32 = arith.constant 0 : index
    %114 = vector.load %arg1[%c5, %c0_31, %c0_32] : memref<8x8x128xf32, #tpu.memory_space<vmem>>, vector<1x8x128xf32>
    %115 = vector.shape_cast %114 : vector<1x8x128xf32> to vector<8x128xf32>
    %116 = arith.truncf %113 : vector<8x32xf32> to vector<8x32xbf16>
    %cst_33 = arith.constant dense<0.000000e+00> : vector<8x128xf32>
    %117 = tpu.matmul %116, %4, %cst_33 {dimension_numbers = #tpu.dot_dimension_numbers<[1], [0], [0], [1], [0, 0, 1, 1], [], []>} : vector<8x32xbf16>, vector<32x128xbf16>, vector<8x128xf32> -> vector<8x128xf32>
    %118 = arith.addf %115, %117 : vector<8x128xf32>
    %119 = vector.extract_strided_slice %118 {offsets = [0, 0], sizes = [8, 96], strides = [1, 1]} : vector<8x128xf32> to vector<8x96xf32>
    %120 = arith.negf %119 : vector<8x96xf32>
    %121 = math.exp %120 : vector<8x96xf32>
    %cst_34 = arith.constant 1.000000e+00 : f32
    %122 = vector.broadcast %cst_34 : f32 to vector<8x96xf32>
    %123 = arith.addf %122, %121 : vector<8x96xf32>
    %124 = arith.divf %122, %123 : vector<8x96xf32>
    %125 = vector.extract_strided_slice %118 {offsets = [0, 96], sizes = [8, 32], strides = [1, 1]} : vector<8x128xf32> to vector<8x32xf32>
    %126 = math.tanh %125 : vector<8x32xf32>
    %127 = vector.extract_strided_slice %124 {offsets = [0, 0], sizes = [8, 32], strides = [1, 1]} : vector<8x96xf32> to vector<8x32xf32>
    %128 = vector.extract_strided_slice %124 {offsets = [0, 32], sizes = [8, 32], strides = [1, 1]} : vector<8x96xf32> to vector<8x32xf32>
    %129 = vector.extract_strided_slice %124 {offsets = [0, 64], sizes = [8, 32], strides = [1, 1]} : vector<8x96xf32> to vector<8x32xf32>
    %130 = arith.mulf %128, %111 : vector<8x32xf32>
    %131 = arith.mulf %127, %126 : vector<8x32xf32>
    %132 = arith.addf %130, %131 : vector<8x32xf32>
    %133 = math.tanh %132 : vector<8x32xf32>
    %134 = arith.mulf %129, %133 : vector<8x32xf32>
    %c6 = arith.constant 6 : index
    %c0_35 = arith.constant 0 : index
    %c0_36 = arith.constant 0 : index
    %135 = vector.load %arg1[%c6, %c0_35, %c0_36] : memref<8x8x128xf32, #tpu.memory_space<vmem>>, vector<1x8x128xf32>
    %136 = vector.shape_cast %135 : vector<1x8x128xf32> to vector<8x128xf32>
    %137 = arith.truncf %134 : vector<8x32xf32> to vector<8x32xbf16>
    %cst_37 = arith.constant dense<0.000000e+00> : vector<8x128xf32>
    %138 = tpu.matmul %137, %4, %cst_37 {dimension_numbers = #tpu.dot_dimension_numbers<[1], [0], [0], [1], [0, 0, 1, 1], [], []>} : vector<8x32xbf16>, vector<32x128xbf16>, vector<8x128xf32> -> vector<8x128xf32>
    %139 = arith.addf %136, %138 : vector<8x128xf32>
    %140 = vector.extract_strided_slice %139 {offsets = [0, 0], sizes = [8, 96], strides = [1, 1]} : vector<8x128xf32> to vector<8x96xf32>
    %141 = arith.negf %140 : vector<8x96xf32>
    %142 = math.exp %141 : vector<8x96xf32>
    %cst_38 = arith.constant 1.000000e+00 : f32
    %143 = vector.broadcast %cst_38 : f32 to vector<8x96xf32>
    %144 = arith.addf %143, %142 : vector<8x96xf32>
    %145 = arith.divf %143, %144 : vector<8x96xf32>
    %146 = vector.extract_strided_slice %139 {offsets = [0, 96], sizes = [8, 32], strides = [1, 1]} : vector<8x128xf32> to vector<8x32xf32>
    %147 = math.tanh %146 : vector<8x32xf32>
    %148 = vector.extract_strided_slice %145 {offsets = [0, 0], sizes = [8, 32], strides = [1, 1]} : vector<8x96xf32> to vector<8x32xf32>
    %149 = vector.extract_strided_slice %145 {offsets = [0, 32], sizes = [8, 32], strides = [1, 1]} : vector<8x96xf32> to vector<8x32xf32>
    %150 = vector.extract_strided_slice %145 {offsets = [0, 64], sizes = [8, 32], strides = [1, 1]} : vector<8x96xf32> to vector<8x32xf32>
    %151 = arith.mulf %149, %132 : vector<8x32xf32>
    %152 = arith.mulf %148, %147 : vector<8x32xf32>
    %153 = arith.addf %151, %152 : vector<8x32xf32>
    %154 = math.tanh %153 : vector<8x32xf32>
    %155 = arith.mulf %150, %154 : vector<8x32xf32>
    %c7 = arith.constant 7 : index
    %c0_39 = arith.constant 0 : index
    %c0_40 = arith.constant 0 : index
    %156 = vector.load %arg1[%c7, %c0_39, %c0_40] : memref<8x8x128xf32, #tpu.memory_space<vmem>>, vector<1x8x128xf32>
    %157 = vector.shape_cast %156 : vector<1x8x128xf32> to vector<8x128xf32>
    %158 = arith.truncf %155 : vector<8x32xf32> to vector<8x32xbf16>
    %cst_41 = arith.constant dense<0.000000e+00> : vector<8x128xf32>
    %159 = tpu.matmul %158, %4, %cst_41 {dimension_numbers = #tpu.dot_dimension_numbers<[1], [0], [0], [1], [0, 0, 1, 1], [], []>} : vector<8x32xbf16>, vector<32x128xbf16>, vector<8x128xf32> -> vector<8x128xf32>
    %160 = arith.addf %157, %159 : vector<8x128xf32>
    %161 = vector.extract_strided_slice %160 {offsets = [0, 0], sizes = [8, 96], strides = [1, 1]} : vector<8x128xf32> to vector<8x96xf32>
    %162 = arith.negf %161 : vector<8x96xf32>
    %163 = math.exp %162 : vector<8x96xf32>
    %cst_42 = arith.constant 1.000000e+00 : f32
    %164 = vector.broadcast %cst_42 : f32 to vector<8x96xf32>
    %165 = arith.addf %164, %163 : vector<8x96xf32>
    %166 = arith.divf %164, %165 : vector<8x96xf32>
    %167 = vector.extract_strided_slice %160 {offsets = [0, 96], sizes = [8, 32], strides = [1, 1]} : vector<8x128xf32> to vector<8x32xf32>
    %168 = math.tanh %167 : vector<8x32xf32>
    %169 = vector.extract_strided_slice %166 {offsets = [0, 0], sizes = [8, 32], strides = [1, 1]} : vector<8x96xf32> to vector<8x32xf32>
    %170 = vector.extract_strided_slice %166 {offsets = [0, 32], sizes = [8, 32], strides = [1, 1]} : vector<8x96xf32> to vector<8x32xf32>
    %171 = vector.extract_strided_slice %166 {offsets = [0, 64], sizes = [8, 32], strides = [1, 1]} : vector<8x96xf32> to vector<8x32xf32>
    %172 = arith.mulf %170, %153 : vector<8x32xf32>
    %173 = arith.mulf %169, %168 : vector<8x32xf32>
    %174 = arith.addf %172, %173 : vector<8x32xf32>
    %175 = math.tanh %174 : vector<8x32xf32>
    %176 = arith.mulf %171, %175 : vector<8x32xf32>
    %c0_43 = arith.constant 0 : index
    %c0_44 = arith.constant 0 : index
    %c0_45 = arith.constant 0 : index
    %177 = vector.load %arg3[%c0_43, %c0_44, %c0_45] : memref<8x8x128xf32, #tpu.memory_space<vmem>>, vector<1x8x128xf32>
    %178 = vector.shape_cast %177 : vector<1x8x128xf32> to vector<8x128xf32>
    %179 = arith.truncf %176 : vector<8x32xf32> to vector<8x32xbf16>
    %cst_46 = arith.constant dense<0.000000e+00> : vector<8x256xf32>
    %180 = tpu.matmul %179, %5, %cst_46 {dimension_numbers = #tpu.dot_dimension_numbers<[1], [0], [0], [1], [0, 0, 1, 1], [], []>} : vector<8x32xbf16>, vector<32x256xbf16>, vector<8x256xf32> -> vector<8x256xf32>
    %181 = vector.extract_strided_slice %180 {offsets = [0, 128], sizes = [8, 128], strides = [1, 1]} : vector<8x256xf32> to vector<8x128xf32>
    %182 = arith.addf %178, %181 : vector<8x128xf32>
    %183 = vector.extract_strided_slice %182 {offsets = [0, 0], sizes = [8, 96], strides = [1, 1]} : vector<8x128xf32> to vector<8x96xf32>
    %184 = arith.negf %183 : vector<8x96xf32>
    %185 = math.exp %184 : vector<8x96xf32>
    %cst_47 = arith.constant 1.000000e+00 : f32
    %186 = vector.broadcast %cst_47 : f32 to vector<8x96xf32>
    %187 = arith.addf %186, %185 : vector<8x96xf32>
    %188 = arith.divf %186, %187 : vector<8x96xf32>
    %189 = vector.extract_strided_slice %182 {offsets = [0, 96], sizes = [8, 32], strides = [1, 1]} : vector<8x128xf32> to vector<8x32xf32>
    %190 = math.tanh %189 : vector<8x32xf32>
    %191 = vector.extract_strided_slice %188 {offsets = [0, 0], sizes = [8, 32], strides = [1, 1]} : vector<8x96xf32> to vector<8x32xf32>
    %192 = vector.extract_strided_slice %188 {offsets = [0, 32], sizes = [8, 32], strides = [1, 1]} : vector<8x96xf32> to vector<8x32xf32>
    %193 = vector.extract_strided_slice %188 {offsets = [0, 64], sizes = [8, 32], strides = [1, 1]} : vector<8x96xf32> to vector<8x32xf32>
    %194 = arith.mulf %192, %174 : vector<8x32xf32>
    %195 = arith.mulf %191, %190 : vector<8x32xf32>
    %196 = arith.addf %194, %195 : vector<8x32xf32>
    %197 = math.tanh %196 : vector<8x32xf32>
    %198 = arith.mulf %193, %197 : vector<8x32xf32>
    %199 = arith.truncf %198 : vector<8x32xf32> to vector<8x32xbf16>
    %cst_48 = arith.constant dense<0.000000e+00> : vector<8x256xf32>
    %200 = tpu.matmul %199, %5, %cst_48 {dimension_numbers = #tpu.dot_dimension_numbers<[1], [0], [0], [1], [0, 0, 1, 1], [], []>} : vector<8x32xbf16>, vector<32x256xbf16>, vector<8x256xf32> -> vector<8x256xf32>
    %201 = vector.extract_strided_slice %200 {offsets = [0, 0], sizes = [8, 128], strides = [1, 1]} : vector<8x256xf32> to vector<8x128xf32>
    %202 = arith.addf %201, %9 : vector<8x128xf32>
    %c1_49 = arith.constant 1 : index
    %c0_50 = arith.constant 0 : index
    %c0_51 = arith.constant 0 : index
    %203 = vector.load %arg7[%c1_49, %c0_50, %c0_51] : memref<8x8x128xf32, #tpu.memory_space<vmem>>, vector<1x8x128xf32>
    %204 = vector.shape_cast %203 : vector<1x8x128xf32> to vector<8x128xf32>
    %205 = vector.shape_cast %202 : vector<8x128xf32> to vector<1x8x128xf32>
    tpu.vector_store %arg7[%c1_49, %c0_50, %c0_51], %205 {strides = array<i32>} : memref<8x8x128xf32, #tpu.memory_space<vmem>>, vector<1x8x128xf32>,
    %cst_52 = arith.constant dense<0xFF800000> : vector<8xf32>
    %206 = vector.multi_reduction <maximumf>, %202, %cst_52 [1] : vector<8x128xf32> to vector<8xf32>
    %207 = vector.shape_cast %206 : vector<8xf32> to vector<8x1xf32>
    %208 = vector.broadcast %207 : vector<8x1xf32> to vector<8x128xf32>
    %209 = arith.cmpf oeq, %202, %208 : vector<8x128xf32>
    %c128_i32 = arith.constant 128 : i32
    %210 = vector.broadcast %c128_i32 : i32 to vector<8x128xi32>
    %211 = arith.select %209, %10, %210 : vector<8x128xi1>, vector<8x128xi32>
    %cst_53 = arith.constant dense<2147483647> : vector<8xi32>
    %212 = vector.multi_reduction <minsi>, %211, %cst_53 [1] : vector<8x128xi32> to vector<8xi32>
    %213 = vector.shape_cast %212 : vector<8xi32> to vector<8x1xi32>
    %214 = vector.broadcast %213 : vector<8x1xi32> to vector<8x128xi32>
    %215 = arith.cmpi eq, %10, %214 : vector<8x128xi32>
    %216 = arith.extui %215 : vector<8x128xi1> to vector<8x128xi32>
    %217 = arith.sitofp %216 : vector<8x128xi32> to vector<8x128xf32>
    %218 = arith.truncf %217 : vector<8x128xf32> to vector<8x128xbf16>
    %cst_54 = arith.constant dense<0.000000e+00> : vector<8x128xf32>
    %219 = tpu.matmul %218, %6, %cst_54 {dimension_numbers = #tpu.dot_dimension_numbers<[1], [0], [0], [1], [0, 0, 1, 1], [], []>} : vector<8x128xbf16>, vector<128x128xbf16>, vector<8x128xf32> -> vector<8x128xf32>
    %c1_55 = arith.constant 1 : index
    %220 = memref.load %arg0[%c1_55] : memref<8xi32, #tpu.memory_space<smem>>
    %c0_i32 = arith.constant 0 : i32
    %221 = arith.cmpi sgt, %220, %c0_i32 : i32
    %c1_56 = arith.constant 1 : index
    %c0_57 = arith.constant 0 : index
    %c0_58 = arith.constant 0 : index
    %222 = vector.load %arg3[%c1_56, %c0_57, %c0_58] : memref<8x8x128xf32, #tpu.memory_space<vmem>>, vector<1x8x128xf32>
    %223 = vector.shape_cast %222 : vector<1x8x128xf32> to vector<8x128xf32>
    %224 = arith.select %221, %223, %219 : vector<8x128xf32>
    %225 = vector.extract_strided_slice %200 {offsets = [0, 128], sizes = [8, 128], strides = [1, 1]} : vector<8x256xf32> to vector<8x128xf32>
    %226 = arith.addf %224, %225 : vector<8x128xf32>
    %227 = vector.extract_strided_slice %226 {offsets = [0, 0], sizes = [8, 96], strides = [1, 1]} : vector<8x128xf32> to vector<8x96xf32>
    %228 = arith.negf %227 : vector<8x96xf32>
    %229 = math.exp %228 : vector<8x96xf32>
    %cst_59 = arith.constant 1.000000e+00 : f32
    %230 = vector.broadcast %cst_59 : f32 to vector<8x96xf32>
    %231 = arith.addf %230, %229 : vector<8x96xf32>
    %232 = arith.divf %230, %231 : vector<8x96xf32>
    %233 = vector.extract_strided_slice %226 {offsets = [0, 96], sizes = [8, 32], strides = [1, 1]} : vector<8x128xf32> to vector<8x32xf32>
    %234 = math.tanh %233 : vector<8x32xf32>
    %235 = vector.extract_strided_slice %232 {offsets = [0, 0], sizes = [8, 32], strides = [1, 1]} : vector<8x96xf32> to vector<8x32xf32>
    %236 = vector.extract_strided_slice %232 {offsets = [0, 32], sizes = [8, 32], strides = [1, 1]} : vector<8x96xf32> to vector<8x32xf32>
    %237 = vector.extract_strided_slice %232 {offsets = [0, 64], sizes = [8, 32], strides = [1, 1]} : vector<8x96xf32> to vector<8x32xf32>
    %238 = arith.mulf %236, %196 : vector<8x32xf32>
    %239 = arith.mulf %235, %234 : vector<8x32xf32>
    %240 = arith.addf %238, %239 : vector<8x32xf32>
    %241 = math.tanh %240 : vector<8x32xf32>
    %242 = arith.mulf %237, %241 : vector<8x32xf32>
    %243 = arith.truncf %242 : vector<8x32xf32> to vector<8x32xbf16>
    %cst_60 = arith.constant dense<0.000000e+00> : vector<8x256xf32>
    %244 = tpu.matmul %243, %5, %cst_60 {dimension_numbers = #tpu.dot_dimension_numbers<[1], [0], [0], [1], [0, 0, 1, 1], [], []>} : vector<8x32xbf16>, vector<32x256xbf16>, vector<8x256xf32> -> vector<8x256xf32>
    %245 = vector.extract_strided_slice %244 {offsets = [0, 0], sizes = [8, 128], strides = [1, 1]} : vector<8x256xf32> to vector<8x128xf32>
    %246 = arith.addf %245, %9 : vector<8x128xf32>
    %c2_61 = arith.constant 2 : index
    %c0_62 = arith.constant 0 : index
    %c0_63 = arith.constant 0 : index
    %247 = vector.load %arg7[%c2_61, %c0_62, %c0_63] : memref<8x8x128xf32, #tpu.memory_space<vmem>>, vector<1x8x128xf32>
    %248 = vector.shape_cast %247 : vector<1x8x128xf32> to vector<8x128xf32>
    %249 = vector.shape_cast %246 : vector<8x128xf32> to vector<1x8x128xf32>
    tpu.vector_store %arg7[%c2_61, %c0_62, %c0_63], %249 {strides = array<i32>} : memref<8x8x128xf32, #tpu.memory_space<vmem>>, vector<1x8x128xf32>,
    %cst_64 = arith.constant dense<0xFF800000> : vector<8xf32>
    %250 = vector.multi_reduction <maximumf>, %246, %cst_64 [1] : vector<8x128xf32> to vector<8xf32>
    %251 = vector.shape_cast %250 : vector<8xf32> to vector<8x1xf32>
    %252 = vector.broadcast %251 : vector<8x1xf32> to vector<8x128xf32>
    %253 = arith.cmpf oeq, %246, %252 : vector<8x128xf32>
    %c128_i32_65 = arith.constant 128 : i32
    %254 = vector.broadcast %c128_i32_65 : i32 to vector<8x128xi32>
    %255 = arith.select %253, %10, %254 : vector<8x128xi1>, vector<8x128xi32>
    %cst_66 = arith.constant dense<2147483647> : vector<8xi32>
    %256 = vector.multi_reduction <minsi>, %255, %cst_66 [1] : vector<8x128xi32> to vector<8xi32>
    %257 = vector.shape_cast %256 : vector<8xi32> to vector<8x1xi32>
    %258 = vector.broadcast %257 : vector<8x1xi32> to vector<8x128xi32>
    %259 = arith.cmpi eq, %10, %258 : vector<8x128xi32>
    %260 = arith.extui %259 : vector<8x128xi1> to vector<8x128xi32>
    %261 = arith.sitofp %260 : vector<8x128xi32> to vector<8x128xf32>
    %262 = arith.truncf %261 : vector<8x128xf32> to vector<8x128xbf16>
    %cst_67 = arith.constant dense<0.000000e+00> : vector<8x128xf32>
    %263 = tpu.matmul %262, %6, %cst_67 {dimension_numbers = #tpu.dot_dimension_numbers<[1], [0], [0], [1], [0, 0, 1, 1], [], []>} : vector<8x128xbf16>, vector<128x128xbf16>, vector<8x128xf32> -> vector<8x128xf32>
    %c2_68 = arith.constant 2 : index
    %264 = memref.load %arg0[%c2_68] : memref<8xi32, #tpu.memory_space<smem>>
    %c0_i32_69 = arith.constant 0 : i32
    %265 = arith.cmpi sgt, %264, %c0_i32_69 : i32
    %c2_70 = arith.constant 2 : index
    %c0_71 = arith.constant 0 : index
    %c0_72 = arith.constant 0 : index
    %266 = vector.load %arg3[%c2_70, %c0_71, %c0_72] : memref<8x8x128xf32, #tpu.memory_space<vmem>>, vector<1x8x128xf32>
    %267 = vector.shape_cast %266 : vector<1x8x128xf32> to vector<8x128xf32>
    %268 = arith.select %265, %267, %263 : vector<8x128xf32>
    %269 = vector.extract_strided_slice %244 {offsets = [0, 128], sizes = [8, 128], strides = [1, 1]} : vector<8x256xf32> to vector<8x128xf32>
    %270 = arith.addf %268, %269 : vector<8x128xf32>
    %271 = vector.extract_strided_slice %270 {offsets = [0, 0], sizes = [8, 96], strides = [1, 1]} : vector<8x128xf32> to vector<8x96xf32>
    %272 = arith.negf %271 : vector<8x96xf32>
    %273 = math.exp %272 : vector<8x96xf32>
    %cst_73 = arith.constant 1.000000e+00 : f32
    %274 = vector.broadcast %cst_73 : f32 to vector<8x96xf32>
    %275 = arith.addf %274, %273 : vector<8x96xf32>
    %276 = arith.divf %274, %275 : vector<8x96xf32>
    %277 = vector.extract_strided_slice %270 {offsets = [0, 96], sizes = [8, 32], strides = [1, 1]} : vector<8x128xf32> to vector<8x32xf32>
    %278 = math.tanh %277 : vector<8x32xf32>
    %279 = vector.extract_strided_slice %276 {offsets = [0, 0], sizes = [8, 32], strides = [1, 1]} : vector<8x96xf32> to vector<8x32xf32>
    %280 = vector.extract_strided_slice %276 {offsets = [0, 32], sizes = [8, 32], strides = [1, 1]} : vector<8x96xf32> to vector<8x32xf32>
    %281 = vector.extract_strided_slice %276 {offsets = [0, 64], sizes = [8, 32], strides = [1, 1]} : vector<8x96xf32> to vector<8x32xf32>
    %282 = arith.mulf %280, %240 : vector<8x32xf32>
    %283 = arith.mulf %279, %278 : vector<8x32xf32>
    %284 = arith.addf %282, %283 : vector<8x32xf32>
    %285 = math.tanh %284 : vector<8x32xf32>
    %286 = arith.mulf %281, %285 : vector<8x32xf32>
    %287 = arith.truncf %286 : vector<8x32xf32> to vector<8x32xbf16>
    %cst_74 = arith.constant dense<0.000000e+00> : vector<8x256xf32>
    %288 = tpu.matmul %287, %5, %cst_74 {dimension_numbers = #tpu.dot_dimension_numbers<[1], [0], [0], [1], [0, 0, 1, 1], [], []>} : vector<8x32xbf16>, vector<32x256xbf16>, vector<8x256xf32> -> vector<8x256xf32>
    %289 = vector.extract_strided_slice %288 {offsets = [0, 0], sizes = [8, 128], strides = [1, 1]} : vector<8x256xf32> to vector<8x128xf32>
    %290 = arith.addf %289, %9 : vector<8x128xf32>
    %c3_75 = arith.constant 3 : index
    %c0_76 = arith.constant 0 : index
    %c0_77 = arith.constant 0 : index
    %291 = vector.load %arg7[%c3_75, %c0_76, %c0_77] : memref<8x8x128xf32, #tpu.memory_space<vmem>>, vector<1x8x128xf32>
    %292 = vector.shape_cast %291 : vector<1x8x128xf32> to vector<8x128xf32>
    %293 = vector.shape_cast %290 : vector<8x128xf32> to vector<1x8x128xf32>
    tpu.vector_store %arg7[%c3_75, %c0_76, %c0_77], %293 {strides = array<i32>} : memref<8x8x128xf32, #tpu.memory_space<vmem>>, vector<1x8x128xf32>,
    %cst_78 = arith.constant dense<0xFF800000> : vector<8xf32>
    %294 = vector.multi_reduction <maximumf>, %290, %cst_78 [1] : vector<8x128xf32> to vector<8xf32>
    %295 = vector.shape_cast %294 : vector<8xf32> to vector<8x1xf32>
    %296 = vector.broadcast %295 : vector<8x1xf32> to vector<8x128xf32>
    %297 = arith.cmpf oeq, %290, %296 : vector<8x128xf32>
    %c128_i32_79 = arith.constant 128 : i32
    %298 = vector.broadcast %c128_i32_79 : i32 to vector<8x128xi32>
    %299 = arith.select %297, %10, %298 : vector<8x128xi1>, vector<8x128xi32>
    %cst_80 = arith.constant dense<2147483647> : vector<8xi32>
    %300 = vector.multi_reduction <minsi>, %299, %cst_80 [1] : vector<8x128xi32> to vector<8xi32>
    %301 = vector.shape_cast %300 : vector<8xi32> to vector<8x1xi32>
    %302 = vector.broadcast %301 : vector<8x1xi32> to vector<8x128xi32>
    %303 = arith.cmpi eq, %10, %302 : vector<8x128xi32>
    %304 = arith.extui %303 : vector<8x128xi1> to vector<8x128xi32>
    %305 = arith.sitofp %304 : vector<8x128xi32> to vector<8x128xf32>
    %306 = arith.truncf %305 : vector<8x128xf32> to vector<8x128xbf16>
    %cst_81 = arith.constant dense<0.000000e+00> : vector<8x128xf32>
    %307 = tpu.matmul %306, %6, %cst_81 {dimension_numbers = #tpu.dot_dimension_numbers<[1], [0], [0], [1], [0, 0, 1, 1], [], []>} : vector<8x128xbf16>, vector<128x128xbf16>, vector<8x128xf32> -> vector<8x128xf32>
    %c3_82 = arith.constant 3 : index
    %308 = memref.load %arg0[%c3_82] : memref<8xi32, #tpu.memory_space<smem>>
    %c0_i32_83 = arith.constant 0 : i32
    %309 = arith.cmpi sgt, %308, %c0_i32_83 : i32
    %c3_84 = arith.constant 3 : index
    %c0_85 = arith.constant 0 : index
    %c0_86 = arith.constant 0 : index
    %310 = vector.load %arg3[%c3_84, %c0_85, %c0_86] : memref<8x8x128xf32, #tpu.memory_space<vmem>>, vector<1x8x128xf32>
    %311 = vector.shape_cast %310 : vector<1x8x128xf32> to vector<8x128xf32>
    %312 = arith.select %309, %311, %307 : vector<8x128xf32>
    %313 = vector.extract_strided_slice %288 {offsets = [0, 128], sizes = [8, 128], strides = [1, 1]} : vector<8x256xf32> to vector<8x128xf32>
    %314 = arith.addf %312, %313 : vector<8x128xf32>
    %315 = vector.extract_strided_slice %314 {offsets = [0, 0], sizes = [8, 96], strides = [1, 1]} : vector<8x128xf32> to vector<8x96xf32>
    %316 = arith.negf %315 : vector<8x96xf32>
    %317 = math.exp %316 : vector<8x96xf32>
    %cst_87 = arith.constant 1.000000e+00 : f32
    %318 = vector.broadcast %cst_87 : f32 to vector<8x96xf32>
    %319 = arith.addf %318, %317 : vector<8x96xf32>
    %320 = arith.divf %318, %319 : vector<8x96xf32>
    %321 = vector.extract_strided_slice %314 {offsets = [0, 96], sizes = [8, 32], strides = [1, 1]} : vector<8x128xf32> to vector<8x32xf32>
    %322 = math.tanh %321 : vector<8x32xf32>
    %323 = vector.extract_strided_slice %320 {offsets = [0, 0], sizes = [8, 32], strides = [1, 1]} : vector<8x96xf32> to vector<8x32xf32>
    %324 = vector.extract_strided_slice %320 {offsets = [0, 32], sizes = [8, 32], strides = [1, 1]} : vector<8x96xf32> to vector<8x32xf32>
    %325 = vector.extract_strided_slice %320 {offsets = [0, 64], sizes = [8, 32], strides = [1, 1]} : vector<8x96xf32> to vector<8x32xf32>
    %326 = arith.mulf %324, %284 : vector<8x32xf32>
    %327 = arith.mulf %323, %322 : vector<8x32xf32>
    %328 = arith.addf %326, %327 : vector<8x32xf32>
    %329 = math.tanh %328 : vector<8x32xf32>
    %330 = arith.mulf %325, %329 : vector<8x32xf32>
    %331 = arith.truncf %330 : vector<8x32xf32> to vector<8x32xbf16>
    %cst_88 = arith.constant dense<0.000000e+00> : vector<8x256xf32>
    %332 = tpu.matmul %331, %5, %cst_88 {dimension_numbers = #tpu.dot_dimension_numbers<[1], [0], [0], [1], [0, 0, 1, 1], [], []>} : vector<8x32xbf16>, vector<32x256xbf16>, vector<8x256xf32> -> vector<8x256xf32>
    %333 = vector.extract_strided_slice %332 {offsets = [0, 0], sizes = [8, 128], strides = [1, 1]} : vector<8x256xf32> to vector<8x128xf32>
    %334 = arith.addf %333, %9 : vector<8x128xf32>
    %c4_89 = arith.constant 4 : index
    %c0_90 = arith.constant 0 : index
    %c0_91 = arith.constant 0 : index
    %335 = vector.load %arg7[%c4_89, %c0_90, %c0_91] : memref<8x8x128xf32, #tpu.memory_space<vmem>>, vector<1x8x128xf32>
    %336 = vector.shape_cast %335 : vector<1x8x128xf32> to vector<8x128xf32>
    %337 = vector.shape_cast %334 : vector<8x128xf32> to vector<1x8x128xf32>
    tpu.vector_store %arg7[%c4_89, %c0_90, %c0_91], %337 {strides = array<i32>} : memref<8x8x128xf32, #tpu.memory_space<vmem>>, vector<1x8x128xf32>,
    %cst_92 = arith.constant dense<0xFF800000> : vector<8xf32>
    %338 = vector.multi_reduction <maximumf>, %334, %cst_92 [1] : vector<8x128xf32> to vector<8xf32>
    %339 = vector.shape_cast %338 : vector<8xf32> to vector<8x1xf32>
    %340 = vector.broadcast %339 : vector<8x1xf32> to vector<8x128xf32>
    %341 = arith.cmpf oeq, %334, %340 : vector<8x128xf32>
    %c128_i32_93 = arith.constant 128 : i32
    %342 = vector.broadcast %c128_i32_93 : i32 to vector<8x128xi32>
    %343 = arith.select %341, %10, %342 : vector<8x128xi1>, vector<8x128xi32>
    %cst_94 = arith.constant dense<2147483647> : vector<8xi32>
    %344 = vector.multi_reduction <minsi>, %343, %cst_94 [1] : vector<8x128xi32> to vector<8xi32>
    %345 = vector.shape_cast %344 : vector<8xi32> to vector<8x1xi32>
    %346 = vector.broadcast %345 : vector<8x1xi32> to vector<8x128xi32>
    %347 = arith.cmpi eq, %10, %346 : vector<8x128xi32>
    %348 = arith.extui %347 : vector<8x128xi1> to vector<8x128xi32>
    %349 = arith.sitofp %348 : vector<8x128xi32> to vector<8x128xf32>
    %350 = arith.truncf %349 : vector<8x128xf32> to vector<8x128xbf16>
    %cst_95 = arith.constant dense<0.000000e+00> : vector<8x128xf32>
    %351 = tpu.matmul %350, %6, %cst_95 {dimension_numbers = #tpu.dot_dimension_numbers<[1], [0], [0], [1], [0, 0, 1, 1], [], []>} : vector<8x128xbf16>, vector<128x128xbf16>, vector<8x128xf32> -> vector<8x128xf32>
    %c4_96 = arith.constant 4 : index
    %352 = memref.load %arg0[%c4_96] : memref<8xi32, #tpu.memory_space<smem>>
    %c0_i32_97 = arith.constant 0 : i32
    %353 = arith.cmpi sgt, %352, %c0_i32_97 : i32
    %c4_98 = arith.constant 4 : index
    %c0_99 = arith.constant 0 : index
    %c0_100 = arith.constant 0 : index
    %354 = vector.load %arg3[%c4_98, %c0_99, %c0_100] : memref<8x8x128xf32, #tpu.memory_space<vmem>>, vector<1x8x128xf32>
    %355 = vector.shape_cast %354 : vector<1x8x128xf32> to vector<8x128xf32>
    %356 = arith.select %353, %355, %351 : vector<8x128xf32>
    %357 = vector.extract_strided_slice %332 {offsets = [0, 128], sizes = [8, 128], strides = [1, 1]} : vector<8x256xf32> to vector<8x128xf32>
    %358 = arith.addf %356, %357 : vector<8x128xf32>
    %359 = vector.extract_strided_slice %358 {offsets = [0, 0], sizes = [8, 96], strides = [1, 1]} : vector<8x128xf32> to vector<8x96xf32>
    %360 = arith.negf %359 : vector<8x96xf32>
    %361 = math.exp %360 : vector<8x96xf32>
    %cst_101 = arith.constant 1.000000e+00 : f32
    %362 = vector.broadcast %cst_101 : f32 to vector<8x96xf32>
    %363 = arith.addf %362, %361 : vector<8x96xf32>
    %364 = arith.divf %362, %363 : vector<8x96xf32>
    %365 = vector.extract_strided_slice %358 {offsets = [0, 96], sizes = [8, 32], strides = [1, 1]} : vector<8x128xf32> to vector<8x32xf32>
    %366 = math.tanh %365 : vector<8x32xf32>
    %367 = vector.extract_strided_slice %364 {offsets = [0, 0], sizes = [8, 32], strides = [1, 1]} : vector<8x96xf32> to vector<8x32xf32>
    %368 = vector.extract_strided_slice %364 {offsets = [0, 32], sizes = [8, 32], strides = [1, 1]} : vector<8x96xf32> to vector<8x32xf32>
    %369 = vector.extract_strided_slice %364 {offsets = [0, 64], sizes = [8, 32], strides = [1, 1]} : vector<8x96xf32> to vector<8x32xf32>
    %370 = arith.mulf %368, %328 : vector<8x32xf32>
    %371 = arith.mulf %367, %366 : vector<8x32xf32>
    %372 = arith.addf %370, %371 : vector<8x32xf32>
    %373 = math.tanh %372 : vector<8x32xf32>
    %374 = arith.mulf %369, %373 : vector<8x32xf32>
    %375 = arith.truncf %374 : vector<8x32xf32> to vector<8x32xbf16>
    %cst_102 = arith.constant dense<0.000000e+00> : vector<8x256xf32>
    %376 = tpu.matmul %375, %5, %cst_102 {dimension_numbers = #tpu.dot_dimension_numbers<[1], [0], [0], [1], [0, 0, 1, 1], [], []>} : vector<8x32xbf16>, vector<32x256xbf16>, vector<8x256xf32> -> vector<8x256xf32>
    %377 = vector.extract_strided_slice %376 {offsets = [0, 0], sizes = [8, 128], strides = [1, 1]} : vector<8x256xf32> to vector<8x128xf32>
    %378 = arith.addf %377, %9 : vector<8x128xf32>
    %c5_103 = arith.constant 5 : index
    %c0_104 = arith.constant 0 : index
    %c0_105 = arith.constant 0 : index
    %379 = vector.load %arg7[%c5_103, %c0_104, %c0_105] : memref<8x8x128xf32, #tpu.memory_space<vmem>>, vector<1x8x128xf32>
    %380 = vector.shape_cast %379 : vector<1x8x128xf32> to vector<8x128xf32>
    %381 = vector.shape_cast %378 : vector<8x128xf32> to vector<1x8x128xf32>
    tpu.vector_store %arg7[%c5_103, %c0_104, %c0_105], %381 {strides = array<i32>} : memref<8x8x128xf32, #tpu.memory_space<vmem>>, vector<1x8x128xf32>,
    %cst_106 = arith.constant dense<0xFF800000> : vector<8xf32>
    %382 = vector.multi_reduction <maximumf>, %378, %cst_106 [1] : vector<8x128xf32> to vector<8xf32>
    %383 = vector.shape_cast %382 : vector<8xf32> to vector<8x1xf32>
    %384 = vector.broadcast %383 : vector<8x1xf32> to vector<8x128xf32>
    %385 = arith.cmpf oeq, %378, %384 : vector<8x128xf32>
    %c128_i32_107 = arith.constant 128 : i32
    %386 = vector.broadcast %c128_i32_107 : i32 to vector<8x128xi32>
    %387 = arith.select %385, %10, %386 : vector<8x128xi1>, vector<8x128xi32>
    %cst_108 = arith.constant dense<2147483647> : vector<8xi32>
    %388 = vector.multi_reduction <minsi>, %387, %cst_108 [1] : vector<8x128xi32> to vector<8xi32>
    %389 = vector.shape_cast %388 : vector<8xi32> to vector<8x1xi32>
    %390 = vector.broadcast %389 : vector<8x1xi32> to vector<8x128xi32>
    %391 = arith.cmpi eq, %10, %390 : vector<8x128xi32>
    %392 = arith.extui %391 : vector<8x128xi1> to vector<8x128xi32>
    %393 = arith.sitofp %392 : vector<8x128xi32> to vector<8x128xf32>
    %394 = arith.truncf %393 : vector<8x128xf32> to vector<8x128xbf16>
    %cst_109 = arith.constant dense<0.000000e+00> : vector<8x128xf32>
    %395 = tpu.matmul %394, %6, %cst_109 {dimension_numbers = #tpu.dot_dimension_numbers<[1], [0], [0], [1], [0, 0, 1, 1], [], []>} : vector<8x128xbf16>, vector<128x128xbf16>, vector<8x128xf32> -> vector<8x128xf32>
    %c5_110 = arith.constant 5 : index
    %396 = memref.load %arg0[%c5_110] : memref<8xi32, #tpu.memory_space<smem>>
    %c0_i32_111 = arith.constant 0 : i32
    %397 = arith.cmpi sgt, %396, %c0_i32_111 : i32
    %c5_112 = arith.constant 5 : index
    %c0_113 = arith.constant 0 : index
    %c0_114 = arith.constant 0 : index
    %398 = vector.load %arg3[%c5_112, %c0_113, %c0_114] : memref<8x8x128xf32, #tpu.memory_space<vmem>>, vector<1x8x128xf32>
    %399 = vector.shape_cast %398 : vector<1x8x128xf32> to vector<8x128xf32>
    %400 = arith.select %397, %399, %395 : vector<8x128xf32>
    %401 = vector.extract_strided_slice %376 {offsets = [0, 128], sizes = [8, 128], strides = [1, 1]} : vector<8x256xf32> to vector<8x128xf32>
    %402 = arith.addf %400, %401 : vector<8x128xf32>
    %403 = vector.extract_strided_slice %402 {offsets = [0, 0], sizes = [8, 96], strides = [1, 1]} : vector<8x128xf32> to vector<8x96xf32>
    %404 = arith.negf %403 : vector<8x96xf32>
    %405 = math.exp %404 : vector<8x96xf32>
    %cst_115 = arith.constant 1.000000e+00 : f32
    %406 = vector.broadcast %cst_115 : f32 to vector<8x96xf32>
    %407 = arith.addf %406, %405 : vector<8x96xf32>
    %408 = arith.divf %406, %407 : vector<8x96xf32>
    %409 = vector.extract_strided_slice %402 {offsets = [0, 96], sizes = [8, 32], strides = [1, 1]} : vector<8x128xf32> to vector<8x32xf32>
    %410 = math.tanh %409 : vector<8x32xf32>
    %411 = vector.extract_strided_slice %408 {offsets = [0, 0], sizes = [8, 32], strides = [1, 1]} : vector<8x96xf32> to vector<8x32xf32>
    %412 = vector.extract_strided_slice %408 {offsets = [0, 32], sizes = [8, 32], strides = [1, 1]} : vector<8x96xf32> to vector<8x32xf32>
    %413 = vector.extract_strided_slice %408 {offsets = [0, 64], sizes = [8, 32], strides = [1, 1]} : vector<8x96xf32> to vector<8x32xf32>
    %414 = arith.mulf %412, %372 : vector<8x32xf32>
    %415 = arith.mulf %411, %410 : vector<8x32xf32>
    %416 = arith.addf %414, %415 : vector<8x32xf32>
    %417 = math.tanh %416 : vector<8x32xf32>
    %418 = arith.mulf %413, %417 : vector<8x32xf32>
    %419 = arith.truncf %418 : vector<8x32xf32> to vector<8x32xbf16>
    %cst_116 = arith.constant dense<0.000000e+00> : vector<8x256xf32>
    %420 = tpu.matmul %419, %5, %cst_116 {dimension_numbers = #tpu.dot_dimension_numbers<[1], [0], [0], [1], [0, 0, 1, 1], [], []>} : vector<8x32xbf16>, vector<32x256xbf16>, vector<8x256xf32> -> vector<8x256xf32>
    %421 = vector.extract_strided_slice %420 {offsets = [0, 0], sizes = [8, 128], strides = [1, 1]} : vector<8x256xf32> to vector<8x128xf32>
    %422 = arith.addf %421, %9 : vector<8x128xf32>
    %c6_117 = arith.constant 6 : index
    %c0_118 = arith.constant 0 : index
    %c0_119 = arith.constant 0 : index
    %423 = vector.load %arg7[%c6_117, %c0_118, %c0_119] : memref<8x8x128xf32, #tpu.memory_space<vmem>>, vector<1x8x128xf32>
    %424 = vector.shape_cast %423 : vector<1x8x128xf32> to vector<8x128xf32>
    %425 = vector.shape_cast %422 : vector<8x128xf32> to vector<1x8x128xf32>
    tpu.vector_store %arg7[%c6_117, %c0_118, %c0_119], %425 {strides = array<i32>} : memref<8x8x128xf32, #tpu.memory_space<vmem>>, vector<1x8x128xf32>,
    %cst_120 = arith.constant dense<0xFF800000> : vector<8xf32>
    %426 = vector.multi_reduction <maximumf>, %422, %cst_120 [1] : vector<8x128xf32> to vector<8xf32>
    %427 = vector.shape_cast %426 : vector<8xf32> to vector<8x1xf32>
    %428 = vector.broadcast %427 : vector<8x1xf32> to vector<8x128xf32>
    %429 = arith.cmpf oeq, %422, %428 : vector<8x128xf32>
    %c128_i32_121 = arith.constant 128 : i32
    %430 = vector.broadcast %c128_i32_121 : i32 to vector<8x128xi32>
    %431 = arith.select %429, %10, %430 : vector<8x128xi1>, vector<8x128xi32>
    %cst_122 = arith.constant dense<2147483647> : vector<8xi32>
    %432 = vector.multi_reduction <minsi>, %431, %cst_122 [1] : vector<8x128xi32> to vector<8xi32>
    %433 = vector.shape_cast %432 : vector<8xi32> to vector<8x1xi32>
    %434 = vector.broadcast %433 : vector<8x1xi32> to vector<8x128xi32>
    %435 = arith.cmpi eq, %10, %434 : vector<8x128xi32>
    %436 = arith.extui %435 : vector<8x128xi1> to vector<8x128xi32>
    %437 = arith.sitofp %436 : vector<8x128xi32> to vector<8x128xf32>
    %438 = arith.truncf %437 : vector<8x128xf32> to vector<8x128xbf16>
    %cst_123 = arith.constant dense<0.000000e+00> : vector<8x128xf32>
    %439 = tpu.matmul %438, %6, %cst_123 {dimension_numbers = #tpu.dot_dimension_numbers<[1], [0], [0], [1], [0, 0, 1, 1], [], []>} : vector<8x128xbf16>, vector<128x128xbf16>, vector<8x128xf32> -> vector<8x128xf32>
    %c6_124 = arith.constant 6 : index
    %440 = memref.load %arg0[%c6_124] : memref<8xi32, #tpu.memory_space<smem>>
    %c0_i32_125 = arith.constant 0 : i32
    %441 = arith.cmpi sgt, %440, %c0_i32_125 : i32
    %c6_126 = arith.constant 6 : index
    %c0_127 = arith.constant 0 : index
    %c0_128 = arith.constant 0 : index
    %442 = vector.load %arg3[%c6_126, %c0_127, %c0_128] : memref<8x8x128xf32, #tpu.memory_space<vmem>>, vector<1x8x128xf32>
    %443 = vector.shape_cast %442 : vector<1x8x128xf32> to vector<8x128xf32>
    %444 = arith.select %441, %443, %439 : vector<8x128xf32>
    %445 = vector.extract_strided_slice %420 {offsets = [0, 128], sizes = [8, 128], strides = [1, 1]} : vector<8x256xf32> to vector<8x128xf32>
    %446 = arith.addf %444, %445 : vector<8x128xf32>
    %447 = vector.extract_strided_slice %446 {offsets = [0, 0], sizes = [8, 96], strides = [1, 1]} : vector<8x128xf32> to vector<8x96xf32>
    %448 = arith.negf %447 : vector<8x96xf32>
    %449 = math.exp %448 : vector<8x96xf32>
    %cst_129 = arith.constant 1.000000e+00 : f32
    %450 = vector.broadcast %cst_129 : f32 to vector<8x96xf32>
    %451 = arith.addf %450, %449 : vector<8x96xf32>
    %452 = arith.divf %450, %451 : vector<8x96xf32>
    %453 = vector.extract_strided_slice %446 {offsets = [0, 96], sizes = [8, 32], strides = [1, 1]} : vector<8x128xf32> to vector<8x32xf32>
    %454 = math.tanh %453 : vector<8x32xf32>
    %455 = vector.extract_strided_slice %452 {offsets = [0, 0], sizes = [8, 32], strides = [1, 1]} : vector<8x96xf32> to vector<8x32xf32>
    %456 = vector.extract_strided_slice %452 {offsets = [0, 32], sizes = [8, 32], strides = [1, 1]} : vector<8x96xf32> to vector<8x32xf32>
    %457 = vector.extract_strided_slice %452 {offsets = [0, 64], sizes = [8, 32], strides = [1, 1]} : vector<8x96xf32> to vector<8x32xf32>
    %458 = arith.mulf %456, %416 : vector<8x32xf32>
    %459 = arith.mulf %455, %454 : vector<8x32xf32>
    %460 = arith.addf %458, %459 : vector<8x32xf32>
    %461 = math.tanh %460 : vector<8x32xf32>
    %462 = arith.mulf %457, %461 : vector<8x32xf32>
    %463 = arith.truncf %462 : vector<8x32xf32> to vector<8x32xbf16>
    %cst_130 = arith.constant dense<0.000000e+00> : vector<8x256xf32>
    %464 = tpu.matmul %463, %5, %cst_130 {dimension_numbers = #tpu.dot_dimension_numbers<[1], [0], [0], [1], [0, 0, 1, 1], [], []>} : vector<8x32xbf16>, vector<32x256xbf16>, vector<8x256xf32> -> vector<8x256xf32>
    %465 = vector.extract_strided_slice %464 {offsets = [0, 0], sizes = [8, 128], strides = [1, 1]} : vector<8x256xf32> to vector<8x128xf32>
    %466 = arith.addf %465, %9 : vector<8x128xf32>
    %c7_131 = arith.constant 7 : index
    %c0_132 = arith.constant 0 : index
    %c0_133 = arith.constant 0 : index
    %467 = vector.load %arg7[%c7_131, %c0_132, %c0_133] : memref<8x8x128xf32, #tpu.memory_space<vmem>>, vector<1x8x128xf32>
    %468 = vector.shape_cast %467 : vector<1x8x128xf32> to vector<8x128xf32>
    %469 = vector.shape_cast %466 : vector<8x128xf32> to vector<1x8x128xf32>
    tpu.vector_store %arg7[%c7_131, %c0_132, %c0_133], %469 {strides = array<i32>} : memref<8x8x128xf32, #tpu.memory_space<vmem>>, vector<1x8x128xf32>,
    return
  }
}

</mosaic_0001>

<bundles_post_ra>
// kernel: seq2seq_forward.1
= control target key start
LH: loop header
LB: loop body
LE: loop exit
PB: predicated region body
PF: predicated region fallthrough
CT: control target
= control target key end

     0   :  { %12 = vsyncpa [#allocation3], 0  ;;  %s2722_s0 = inlined_call_operand.vmem [shape: s32[8], index: 0, kind: input, shape index: {}]   ;;  %s2723_s1 = inlined_call_operand.vmem [shape: f32[8,8,128], index: 1, kind: input, shape index: {}]   ;;  %s2724_s2 = inlined_call_operand.vmem [shape: bf16[32,128], index: 2, kind: input, shape index: {}]   ;;  %s2725_s3 = inlined_call_operand.vmem [shape: f32[8,8,128], index: 3, kind: input, shape index: {}]   ;;  %s2726_s4 = inlined_call_operand.vmem [shape: bf16[128,128], index: 4, kind: input, shape index: {}]   ;;  %s2727_s5 = inlined_call_operand.vmem [shape: bf16[32,256], index: 5, kind: input, shape index: {}]   ;;  %s2728_s6 = inlined_call_operand.vmem [shape: f32[1,128], index: 6, kind: input, shape index: {}]   ;;  %s2729_s7 = inlined_call_operand.vmem [shape: f32[8,8,128], index: 7, kind: output, shape index: {}]  }
   0x1   :  { %s19_s26 = sshll.u32 %s2722_s0, 4  ;;  %s20_s26 = int_to_ptr.vmem [resolvable:$true] %s19_s26 }
   0x2   :  { %s2187_s27 = scalar_lea.vmem %s20_s26, 16  ;;  %p2192_p1 = scmp.lt.s32.totalorder %s20_s26, %s20_s26 }
   0x3   :  { %p2188_p0 = scmp.ne.s32.totalorder %s20_s26, %s2187_s27  ;;  %p2193_p2 = scmp.lt.s32.totalorder %s2187_s27, %s2187_s27 }
   0x5   :  { %p2194_p3 = por %p2193_p2, %p2192_p1 }
   0x7   :  { %p2195_p4 = pnand %p2194_p3, %p2188_p0 }
   0x9   :  { %2198 = shalt.err (!%p2195_p4)
}
   0xa   :  { %s2201_s28 = smov [#allocation2]  }
   0xb   :  { %22 = dma.vmem_to_smem %s20_s26, 16, %s2201_s28, [#allocation3]  }
   0xc   :  { %2199 = dma.done.wait [#allocation3], 16  }
   0xd   :  { %2200 = vsyncadd [#allocation3], 4294967280 }
   0xe   :  { %38 = sfence }
   0xf   :  { %v74_v0 = vld [vmem:[%s2723_s1] sm:$0xff]  ;;  %s2202_s0 = smov 32   ;;  %v2203_v12 = vmov 0.0   ;;  %v2271_v13 = vld [vmem:[%s2724_s2 + $0x8] sm:$0xff]   ;;  %vm2204_vm0 = vmmov 0   ;;  %vm117_vm1 = vcmask 261120  }
  0x10   :  { %2065 = vtanh.f32 %v74_v0  ;;  %v1703_v2 = vmul.f32 -1.442695, %v74_v0  ;;  %v2259_v11 = vld [vmem:[%s2724_s2] sm:$0xff]   ;;  %40 = vst [vmem:[%s2729_s7] sm:$0xff] %v2203_v12  ;;  %1866 = vmatprep.subr.bf16.mxu0 %v2203_v12  ;;  %1874 = vmatprep.subr.bf16.mxu1 %v2203_v12  ;;  %s2205_s2 = smov 64   ;;  %v1704_v19 = vld [vmem:[%s2723_s1 + $0x8] sm:$0xff]  ;;  %v1709_v40 = vld [vmem:[%s2723_s1 + $0x10] sm:$0xff] }
  0x11   :  { %1867 = vmatpush3.bf16.msra.mxu0 %v2259_v11  ;;  %1875 = vmatpush3.bf16.msra.mxu1 %v2259_v11  ;;  %v1712_v61 = vld [vmem:[%s2723_s1 + $0x18] sm:$0xff]  ;;  %s1754_s13 = sld [smem:[#allocation2 + $0x2]]  ;;  %s1762_s21 = sld [smem:[#allocation2 + $0x3]] }
  0x12   :  { %2067 = vpow2.f32 %v1703_v2  ;;  %1868 = vmatprep.subr.bf16.mxu0 %v2203_v12  ;;  %1876 = vmatprep.subr.bf16.mxu1 %v2203_v12  ;;  %s1770_s27 = sld [smem:[#allocation2 + $0x4]] }
  0x13   :  { %1870 = vmatprep.mubr.msk.bf16.mxu0 %vm2204_vm0, %v2203_v12  ;;  %1878 = vmatprep.mubr.msk.bf16.mxu1 %vm2204_vm0, %v2203_v12 }
  0x15   :  { %1869 = vmatpush3.bf16.msra.mxu0 %v2271_v13  ;;  %1877 = vmatpush3.bf16.msra.mxu1 %v2271_v13 }
  0x16   :  { %1882 = vmatprep.subr.bf16.mxu0 %v2203_v12  ;;  %1890 = vmatprep.subr.bf16.mxu1 %v2203_v12 }
  0x17   :  { %p1031_p6 = scmp.gt.s32.totalorder %s1754_s13, 0  ;;  %p1177_p7 = scmp.gt.s32.totalorder %s1762_s21, 0 }
  0x18   :  { %p1323_p8 = scmp.gt.s32.totalorder %s1770_s27, 0  ;;  %s1786_s13 = sld [smem:[#allocation2 + $0x6]] }
  0x19   :  { %s1034_s14 = scalar_select %p1031_p6, 1, 0 }
  0x1a   :  { %v2066_v1 = vpop.eup %2065  ;;  %s1180_s22 = scalar_select %p1177_p7, 1, 0 }
  0x1b   :  { %84 = vrot.lane.b32.xlu0 %v2066_v1, %s2202_s0 }
  0x1c   :  { %v2068_v3 = vpop.eup %2067 }
  0x1d   :  { %v78_v4 = vadd.f32 1.0, %v2068_v3 }
  0x1e   :  { %p1615_p10 = scmp.gt.s32.totalorder %s1786_s13, 0 }
  0x1f   :  { %2069 = vrcp.f32 %v78_v4 }
  0x29   :  { %v2070_v5 = vpop.eup %2069 }
  0x2a   :  { %v82_v8 = vmul.f32 0.0, %v2070_v5 }
  0x8d   :  { %v85_v6 = vpop.permute.xlu0 %84 }
  0x8e   :  { %v87_v7 = vmul.f32 %v2070_v5, %v85_v6 }
  0x90   :  { %89 = vrot.lane.b32.xlu0 %v87_v7, %s2202_s0 }
 0x102   :  { %v90_v9 = vpop.permute.xlu0 %89 }
 0x103   :  { %v92_v10 = vadd.f32 %v90_v9, %v82_v8 }
 0x105   :  { %2071 = vtanh.f32 %v92_v10 }
 0x10f   :  { %v2072_v14 = vpop.eup %2071 }
 0x110   :  { %95 = vrot.lane.b32.xlu1 %v2072_v14, %s2202_s0 }
 0x182   :  { %v96_v15 = vpop.permute.xlu1 %95 }
 0x183   :  { %v98_v16 = vmul.f32 %v2070_v5, %v96_v15 }
 0x185   :  { %v101_v17 = vpack.c.bf16 %v98_v16, %v98_v16 }
 0x187   :  { %103 = vrot.lane.b32.xlu1 %v101_v17, %s2205_s2 }
 0x1f9   :  { %v104_v18 = vpop.permute.xlu1 %103 }
 0x1fa   :  { %1871 = vmatmul.mubr.msk.bf16.vlgmr.msra.gmra.mrb[0].mxu0 %vm117_vm1, %v104_v18 }
 0x1fb   :  { %1883 = vmatpush3.bf16.msra.mxu0 %v2259_v11  ;;  %1886 = vmatprep.mubr.msk.bf16.mxu0 %vm2204_vm0, %v2203_v12 }
 0x1fc   :  { %1884 = vmatprep.subr.bf16.mxu0 %v2203_v12 }
 0x1ff   :  { %1885 = vmatpush3.bf16.msra.mxu0 %v2271_v13 }
 0x200   :  { %1898 = vmatprep.subr.bf16.mxu0 %v2203_v12 }
 0x2cd   :  { %v155_v20 = vpop.f32.mrb[0].mxu0 }
 0x2ce   :  { %v161_v21 = vadd.f32 %v1704_v19, %v155_v20  ;;  %v1872_v22 = vpop.f32.mrb[1].mxu0 }
 0x2cf   :  { %v158_v23 = vpop.f32.mrb[2].mxu0 }
 0x2d0   :  { %2073 = vtanh.f32 %v161_v21  ;;  %v1873_v24 = vpop.f32.mrb[3].mxu0  ;;  %v1708_v26 = vmul.f32 -1.442695, %v161_v21  ;;  %v1715_v21 = vld [vmem:[%s2723_s1 + $0x20] sm:$0xff] }
 0x2d2   :  { %2075 = vpow2.f32 %v1708_v26 }
 0x2da   :  { %v2074_v25 = vpop.eup %2073 }
 0x2db   :  { %171 = vrot.lane.b32.xlu0 %v2074_v25, %s2202_s0 }
 0x2dc   :  { %v2076_v27 = vpop.eup %2075 }
 0x2dd   :  { %v165_v28 = vadd.f32 1.0, %v2076_v27 }
 0x2df   :  { %2077 = vrcp.f32 %v165_v28 }
 0x2e9   :  { %v2078_v29 = vpop.eup %2077 }
 0x2ea   :  { %v169_v32 = vmul.f32 %v2078_v29, %v92_v10 }
 0x34d   :  { %v172_v30 = vpop.permute.xlu0 %171 }
 0x34e   :  { %v174_v31 = vmul.f32 %v2078_v29, %v172_v30 }
 0x350   :  { %176 = vrot.lane.b32.xlu1 %v174_v31, %s2202_s0 }
 0x3c2   :  { %v177_v33 = vpop.permute.xlu1 %176 }
 0x3c3   :  { %v179_v34 = vadd.f32 %v177_v33, %v169_v32 }
 0x3c5   :  { %2079 = vtanh.f32 %v179_v34 }
 0x3cf   :  { %v2080_v35 = vpop.eup %2079 }
 0x3d0   :  { %182 = vrot.lane.b32.xlu0 %v2080_v35, %s2202_s0 }
 0x442   :  { %v183_v36 = vpop.permute.xlu0 %182 }
 0x443   :  { %v185_v37 = vmul.f32 %v2078_v29, %v183_v36 }
 0x445   :  { %v188_v38 = vpack.c.bf16 %v185_v37, %v185_v37 }
 0x447   :  { %190 = vrot.lane.b32.xlu1 %v188_v38, %s2205_s2 }
 0x4b9   :  { %v191_v39 = vpop.permute.xlu1 %190 }
 0x4ba   :  { %1879 = vmatmul.mubr.msk.bf16.vlgmr.msra.gmra.mrb[0].mxu1 %vm117_vm1, %v191_v39 }
 0x4bb   :  { %1891 = vmatpush3.bf16.msra.mxu1 %v2259_v11  ;;  %1894 = vmatprep.mubr.msk.bf16.mxu1 %vm2204_vm0, %v2203_v12 }
 0x4bc   :  { %1892 = vmatprep.subr.bf16.mxu1 %v2203_v12 }
 0x4bf   :  { %1893 = vmatpush3.bf16.msra.mxu1 %v2271_v13 }
 0x4c0   :  { %1906 = vmatprep.subr.bf16.mxu1 %v2203_v12 }
 0x58d   :  { %v229_v41 = vpop.f32.mrb[0].mxu1 }
 0x58e   :  { %v235_v42 = vadd.f32 %v1709_v40, %v229_v41  ;;  %v1880_v43 = vpop.f32.mrb[1].mxu1 }
 0x58f   :  { %v232_v44 = vpop.f32.mrb[2].mxu1 }
 0x590   :  { %2081 = vtanh.f32 %v235_v42  ;;  %v1881_v45 = vpop.f32.mrb[3].mxu1  ;;  %v1711_v47 = vmul.f32 -1.442695, %v235_v42  ;;  %v1718_v42 = vld [vmem:[%s2723_s1 + $0x28] sm:$0xff] }
 0x592   :  { %2083 = vpow2.f32 %v1711_v47 }
 0x59a   :  { %v2082_v46 = vpop.eup %2081 }
 0x59b   :  { %245 = vrot.lane.b32.xlu0 %v2082_v46, %s2202_s0 }
 0x59c   :  { %v2084_v48 = vpop.eup %2083 }
 0x59d   :  { %v239_v49 = vadd.f32 1.0, %v2084_v48 }
 0x59f   :  { %2085 = vrcp.f32 %v239_v49 }
 0x5a9   :  { %v2086_v50 = vpop.eup %2085 }
 0x5aa   :  { %v243_v53 = vmul.f32 %v2086_v50, %v179_v34 }
 0x60d   :  { %v246_v51 = vpop.permute.xlu0 %245 }
 0x60e   :  { %v248_v52 = vmul.f32 %v2086_v50, %v246_v51 }
 0x610   :  { %250 = vrot.lane.b32.xlu1 %v248_v52, %s2202_s0 }
 0x682   :  { %v251_v54 = vpop.permute.xlu1 %250 }
 0x683   :  { %v253_v55 = vadd.f32 %v251_v54, %v243_v53 }
 0x685   :  { %2087 = vtanh.f32 %v253_v55 }
 0x68f   :  { %v2088_v56 = vpop.eup %2087 }
 0x690   :  { %256 = vrot.lane.b32.xlu0 %v2088_v56, %s2202_s0 }
 0x702   :  { %v257_v57 = vpop.permute.xlu0 %256 }
 0x703   :  { %v259_v58 = vmul.f32 %v2086_v50, %v257_v57 }
 0x705   :  { %v262_v59 = vpack.c.bf16 %v259_v58, %v259_v58 }
 0x707   :  { %264 = vrot.lane.b32.xlu1 %v262_v59, %s2205_s2 }
 0x779   :  { %v265_v60 = vpop.permute.xlu1 %264 }
 0x77a   :  { %1887 = vmatmul.mubr.msk.bf16.vlgmr.msra.gmra.mrb[4].mxu0 %vm117_vm1, %v265_v60 }
 0x77b   :  { %1899 = vmatpush3.bf16.msra.mxu0 %v2259_v11  ;;  %1902 = vmatprep.mubr.msk.bf16.mxu0 %vm2204_vm0, %v2203_v12 }
 0x77c   :  { %1900 = vmatprep.subr.bf16.mxu0 %v2203_v12 }
 0x77f   :  { %1901 = vmatpush3.bf16.msra.mxu0 %v2271_v13 }
 0x780   :  { %1914 = vmatprep.subr.bf16.mxu0 %v2203_v12 }
 0x84d   :  { %v303_v62 = vpop.f32.mrb[4].mxu0 }
 0x84e   :  { %v309_v63 = vadd.f32 %v1712_v61, %v303_v62  ;;  %v1888_v0 = vpop.f32.mrb[5].mxu0  ;;  %v1721_v61 = vld [vmem:[%s2723_s1 + $0x30] sm:$0xff] }
 0x84f   :  { %v306_v1 = vpop.f32.mrb[6].mxu0 }
 0x850   :  { %2089 = vtanh.f32 %v309_v63  ;;  %v1889_v2 = vpop.f32.mrb[7].mxu0  ;;  %v1714_v4 = vmul.f32 -1.442695, %v309_v63 }
 0x852   :  { %2091 = vpow2.f32 %v1714_v4 }
 0x85a   :  { %v2090_v3 = vpop.eup %2089 }
 0x85b   :  { %319 = vrot.lane.b32.xlu0 %v2090_v3, %s2202_s0 }
 0x85c   :  { %v2092_v5 = vpop.eup %2091 }
 0x85d   :  { %v313_v6 = vadd.f32 1.0, %v2092_v5 }
 0x85f   :  { %2093 = vrcp.f32 %v313_v6 }
 0x869   :  { %v2094_v7 = vpop.eup %2093 }
 0x86a   :  { %v317_v10 = vmul.f32 %v2094_v7, %v253_v55 }
 0x8cd   :  { %v320_v8 = vpop.permute.xlu0 %319 }
 0x8ce   :  { %v322_v9 = vmul.f32 %v2094_v7, %v320_v8 }
 0x8d0   :  { %324 = vrot.lane.b32.xlu1 %v322_v9, %s2202_s0 }
 0x942   :  { %v325_v14 = vpop.permute.xlu1 %324 }
 0x943   :  { %v327_v15 = vadd.f32 %v325_v14, %v317_v10 }
 0x945   :  { %2095 = vtanh.f32 %v327_v15 }
 0x94f   :  { %v2096_v16 = vpop.eup %2095 }
 0x950   :  { %330 = vrot.lane.b32.xlu0 %v2096_v16, %s2202_s0 }
 0x9c2   :  { %v331_v17 = vpop.permute.xlu0 %330 }
 0x9c3   :  { %v333_v18 = vmul.f32 %v2094_v7, %v331_v17 }
 0x9c5   :  { %v336_v19 = vpack.c.bf16 %v333_v18, %v333_v18 }
 0x9c7   :  { %338 = vrot.lane.b32.xlu1 %v336_v19, %s2205_s2 }
 0xa39   :  { %v339_v20 = vpop.permute.xlu1 %338 }
 0xa3a   :  { %1895 = vmatmul.mubr.msk.bf16.vlgmr.msra.gmra.mrb[4].mxu1 %vm117_vm1, %v339_v20 }
 0xa3b   :  { %1907 = vmatpush3.bf16.msra.mxu1 %v2259_v11  ;;  %1910 = vmatprep.mubr.msk.bf16.mxu1 %vm2204_vm0, %v2203_v12 }
 0xa3c   :  { %1908 = vmatprep.subr.bf16.mxu1 %v2203_v12 }
 0xa3f   :  { %1909 = vmatpush3.bf16.msra.mxu1 %v2271_v13 }
 0xb0d   :  { %v377_v22 = vpop.f32.mrb[4].mxu1 }
 0xb0e   :  { %v383_v23 = vadd.f32 %v1715_v21, %v377_v22  ;;  %v1896_v24 = vpop.f32.mrb[5].mxu1  ;;  %v1724_v21 = vld [vmem:[%s2723_s1 + $0x38] sm:$0xff]  ;;  %s1326_s1 = scalar_select %p1323_p8, 1, 0 }
 0xb0f   :  { %v380_v25 = vpop.f32.mrb[6].mxu1 }
 0xb10   :  { %2097 = vtanh.f32 %v383_v23  ;;  %v1897_v26 = vpop.f32.mrb[7].mxu1  ;;  %v1717_v28 = vmul.f32 -1.442695, %v383_v23 }
 0xb12   :  { %2099 = vpow2.f32 %v1717_v28 }
 0xb1a   :  { %v2098_v27 = vpop.eup %2097 }
 0xb1b   :  { %393 = vrot.lane.b32.xlu0 %v2098_v27, %s2202_s0 }
 0xb1c   :  { %v2100_v29 = vpop.eup %2099 }
 0xb1d   :  { %v387_v30 = vadd.f32 1.0, %v2100_v29 }
 0xb1f   :  { %2101 = vrcp.f32 %v387_v30 }
 0xb29   :  { %v2102_v31 = vpop.eup %2101 }
 0xb2a   :  { %v391_v34 = vmul.f32 %v2102_v31, %v327_v15 }
 0xb8d   :  { %v394_v32 = vpop.permute.xlu0 %393 }
 0xb8e   :  { %v396_v33 = vmul.f32 %v2102_v31, %v394_v32 }
 0xb90   :  { %398 = vrot.lane.b32.xlu1 %v396_v33, %s2202_s0 }
 0xc02   :  { %v399_v35 = vpop.permute.xlu1 %398 }
 0xc03   :  { %v401_v36 = vadd.f32 %v399_v35, %v391_v34 }
 0xc05   :  { %2103 = vtanh.f32 %v401_v36 }
 0xc0f   :  { %v2104_v37 = vpop.eup %2103 }
 0xc10   :  { %404 = vrot.lane.b32.xlu0 %v2104_v37, %s2202_s0  ;;  %v2371_v37 = vld [vmem:[%s2727_s5 + $0x4] ss:$8 sps:$4 sm:$0xff]  }
 0xc11   :  { %658 = vmatprep.subr.bf16.mxu1 %v2371_v37 }
 0xc82   :  { %v405_v38 = vpop.permute.xlu0 %404 }
 0xc83   :  { %v407_v39 = vmul.f32 %v2102_v31, %v405_v38  ;;  %v2376_v38 = vld [vmem:[%s2727_s5] ss:$8 sps:$4 sm:$0xff]  }
 0xc85   :  { %v410_v40 = vpack.c.bf16 %v407_v39, %v407_v39  ;;  %v2381_v39 = vld [vmem:[%s2727_s5 + $0x14] ss:$8 sps:$4 sm:$0xff]  }
 0xc87   :  { %412 = vrot.lane.b32.xlu1 %v410_v40, %s2205_s2  ;;  %v2206_v40 = vmov 0  }
 0xcf9   :  { %v413_v41 = vpop.permute.xlu1 %412 }
 0xcfa   :  { %1903 = vmatmul.mubr.msk.bf16.vlgmr.msra.gmra.mrb[8].mxu0 %vm117_vm1, %v413_v41  ;;  %v2389_v41 = vld [vmem:[%s2727_s5 + $0x10] ss:$8 sps:$4 sm:$0xff]  }
 0xcfb   :  { %1915 = vmatpush3.bf16.msra.mxu0 %v2259_v11  ;;  %1918 = vmatprep.mubr.msk.bf16.mxu0 %vm2204_vm0, %v2203_v12 }
 0xcfc   :  { %1916 = vmatprep.subr.bf16.mxu0 %v2203_v12 }
 0xcff   :  { %1917 = vmatpush3.bf16.msra.mxu0 %v2271_v13 }
 0xd00   :  { %730 = vmatprep.subr.bf16.mxu0 %v2371_v37 }
 0xdcd   :  { %v451_v43 = vpop.f32.mrb[8].mxu0 }
 0xdce   :  { %v457_v44 = vadd.f32 %v1718_v42, %v451_v43  ;;  %v1904_v45 = vpop.f32.mrb[9].mxu0 }
 0xdcf   :  { %v454_v46 = vpop.f32.mrb[10].mxu0 }
 0xdd0   :  { %2105 = vtanh.f32 %v457_v44  ;;  %v1905_v47 = vpop.f32.mrb[11].mxu0  ;;  %v1720_v11 = vmul.f32 -1.442695, %v457_v44 }
 0xdd1   :  { %v630_v47 = vld [vmem:[%s2725_s3] sm:$0xff] }
 0xdd2   :  { %2107 = vpow2.f32 %v1720_v11 }
 0xdda   :  { %v2106_v48 = vpop.eup %2105 }
 0xddb   :  { %467 = vrot.lane.b32.xlu0 %v2106_v48, %s2202_s0 }
 0xddc   :  { %v2108_v49 = vpop.eup %2107 }
 0xddd   :  { %v461_v50 = vadd.f32 1.0, %v2108_v49 }
 0xddf   :  { %2109 = vrcp.f32 %v461_v50 }
 0xde9   :  { %v2110_v51 = vpop.eup %2109 }
 0xdea   :  { %v465_v53 = vmul.f32 %v2110_v51, %v401_v36 }
 0xe4d   :  { %v468_v13 = vpop.permute.xlu0 %467 }
 0xe4e   :  { %v470_v52 = vmul.f32 %v2110_v51, %v468_v13 }
 0xe50   :  { %472 = vrot.lane.b32.xlu1 %v470_v52, %s2202_s0 }
 0xec2   :  { %v473_v54 = vpop.permute.xlu1 %472 }
 0xec3   :  { %v475_v55 = vadd.f32 %v473_v54, %v465_v53 }
 0xec5   :  { %2111 = vtanh.f32 %v475_v55 }
 0xecf   :  { %v2112_v56 = vpop.eup %2111 }
 0xed0   :  { %478 = vrot.lane.b32.xlu0 %v2112_v56, %s2202_s0 }
 0xf42   :  { %v479_v57 = vpop.permute.xlu0 %478 }
 0xf43   :  { %v481_v58 = vmul.f32 %v2110_v51, %v479_v57 }
 0xf45   :  { %v484_v59 = vpack.c.bf16 %v481_v58, %v481_v58 }
 0xf47   :  { %486 = vrot.lane.b32.xlu1 %v484_v59, %s2205_s2 }
 0xfb9   :  { %v487_v60 = vpop.permute.xlu1 %486 }
 0xfba   :  { %1911 = vmatmul.mubr.msk.bf16.vlgmr.msra.gmra.mrb[8].mxu1 %vm117_vm1, %v487_v60 }
 0xfbb   :  { %690 = vmatprep.mubr.bf16.mxu1 %v2206_v40  ;;  %659 = vmatpush1.bf16.msra.mxu1 %v2376_v38 }
 0xfbc   :  { %660 = vmatprep.subr.bf16.mxu1 %v2381_v39 }
 0xfbf   :  { %661 = vmatpush1.bf16.msra.mxu1 %v2389_v41 }
 0xfc0   :  { %1922 = vmatprep.subr.bf16.mxu1 %v2203_v12 }
0x108d   :  { %v525_v62 = vpop.f32.mrb[8].mxu1 }
0x108e   :  { %v531_v63 = vadd.f32 %v1721_v61, %v525_v62  ;;  %v1912_v0 = vpop.f32.mrb[9].mxu1 }
0x108f   :  { %v528_v1 = vpop.f32.mrb[10].mxu1 }
0x1090   :  { %2113 = vtanh.f32 %v531_v63  ;;  %v1913_v2 = vpop.f32.mrb[11].mxu1  ;;  %v1723_v4 = vmul.f32 -1.442695, %v531_v63 }
0x1091   :  { %v2424_v2 = vld [vmem:[%s2728_s6] ss:$0 sm:$0xff] }
0x1092   :  { %2115 = vpow2.f32 %v1723_v4 }
0x109a   :  { %v2114_v3 = vpop.eup %2113 }
0x109b   :  { %541 = vrot.lane.b32.xlu0 %v2114_v3, %s2202_s0 }
0x109c   :  { %v2116_v5 = vpop.eup %2115 }
0x109d   :  { %v535_v6 = vadd.f32 1.0, %v2116_v5 }
0x109f   :  { %2117 = vrcp.f32 %v535_v6 }
0x10a9   :  { %v2118_v7 = vpop.eup %2117 }
0x10aa   :  { %v539_v10 = vmul.f32 %v2118_v7, %v475_v55 }
0x110d   :  { %v542_v8 = vpop.permute.xlu0 %541 }
0x110e   :  { %v544_v9 = vmul.f32 %v2118_v7, %v542_v8  ;;  %v72_v8 = vlaneseq }
0x1110   :  { %546 = vrot.lane.b32.xlu1 %v544_v9, %s2202_s0  ;;  %v2432_v9 = vand.u32 127, %v72_v8 }
0x1182   :  { %v547_v14 = vpop.permute.xlu1 %546 }
0x1183   :  { %v549_v15 = vadd.f32 %v547_v14, %v539_v10 }
0x1185   :  { %2119 = vtanh.f32 %v549_v15 }
0x118f   :  { %v2120_v16 = vpop.eup %2119 }
0x1190   :  { %552 = vrot.lane.b32.xlu0 %v2120_v16, %s2202_s0 }
0x1202   :  { %v553_v17 = vpop.permute.xlu0 %552 }
0x1203   :  { %v555_v18 = vmul.f32 %v2118_v7, %v553_v17  ;;  %v2438_v17 = vld [vmem:[%s2726_s4] sm:$0xff]  }
0x1205   :  { %v558_v19 = vpack.c.bf16 %v555_v18, %v555_v18  ;;  %v2444_v18 = vld [vmem:[%s2726_s4 + $0x8] sm:$0xff]  }
0x1207   :  { %560 = vrot.lane.b32.xlu1 %v558_v19, %s2205_s2  ;;  %v2451_v19 = vld [vmem:[%s2726_s4 + $0x10] sm:$0xff]  }
0x1279   :  { %v561_v20 = vpop.permute.xlu1 %560 }
0x127a   :  { %1919 = vmatmul.mubr.msk.bf16.vlgmr.msra.gmra.mrb[12].mxu0 %vm117_vm1, %v561_v20  ;;  %v2458_v20 = vld [vmem:[%s2726_s4 + $0x18] sm:$0xff]  }
0x127b   :  { %731 = vmatpush1.bf16.msra.mxu0 %v2376_v38  ;;  %762 = vmatprep.mubr.bf16.mxu0 %v2206_v40 }
0x127c   :  { %732 = vmatprep.subr.bf16.mxu0 %v2381_v39 }
0x127f   :  { %733 = vmatpush1.bf16.msra.mxu0 %v2389_v41 }
0x1280   :  { %924 = vmatprep.subr.bf16.mxu0 %v2371_v37 }
0x134d   :  { %v599_v22 = vpop.f32.mrb[12].mxu0 }
0x134e   :  { %v605_v23 = vadd.f32 %v1724_v21, %v599_v22  ;;  %v1920_v24 = vpop.f32.mrb[13].mxu0  ;;  %v2465_v21 = vld [vmem:[%s2726_s4 + $0x20] sm:$0xff]   ;;  %v2472_v22 = vld [vmem:[%s2726_s4 + $0x28] sm:$0xff]  }
0x134f   :  { %v602_v25 = vpop.f32.mrb[14].mxu0 }
0x1350   :  { %2121 = vtanh.f32 %v605_v23  ;;  %v1921_v26 = vpop.f32.mrb[15].mxu0  ;;  %v1726_v28 = vmul.f32 -1.442695, %v605_v23  ;;  %v2479_v23 = vld [vmem:[%s2726_s4 + $0x30] sm:$0xff]  }
0x1352   :  { %2123 = vpow2.f32 %v1726_v28  ;;  %v2487_v28 = vld [vmem:[%s2726_s4 + $0x38] sm:$0xff]   ;;  %s1746_s4 = sld [smem:[#allocation2 + $0x1]] }
0x1358   :  { %p885_p5 = scmp.gt.s32.totalorder %s1746_s4, 0  ;;  %s1778_s4 = sld [smem:[#allocation2 + $0x5]] }
0x135a   :  { %v2122_v27 = vpop.eup %2121  ;;  %s888_s9 = scalar_select %p885_p5, 1, 0 }
0x135b   :  { %615 = vrot.lane.b32.xlu0 %v2122_v27, %s2202_s0 }
0x135c   :  { %v2124_v29 = vpop.eup %2123 }
0x135d   :  { %v609_v30 = vadd.f32 1.0, %v2124_v29 }
0x135e   :  { %p1469_p9 = scmp.gt.s32.totalorder %s1778_s4, 0 }
0x135f   :  { %2125 = vrcp.f32 %v609_v30 }
0x1369   :  { %v2126_v31 = vpop.eup %2125 }
0x136a   :  { %v613_v34 = vmul.f32 %v2126_v31, %v549_v15 }
0x13cd   :  { %v616_v32 = vpop.permute.xlu0 %615 }
0x13ce   :  { %v618_v33 = vmul.f32 %v2126_v31, %v616_v32 }
0x13d0   :  { %620 = vrot.lane.b32.xlu1 %v618_v33, %s2202_s0 }
0x1442   :  { %v621_v35 = vpop.permute.xlu1 %620 }
0x1443   :  { %v623_v36 = vadd.f32 %v621_v35, %v613_v34  ;;  %v2207_v34 = vmov 1.0|1.0   ;;  %v889_v35 = vstv %s888_s9  ;;  %s1472_s9 = scalar_select %p1469_p9, 1, 0 }
0x1444   :  { %vm890_vm6 = vcmp.eq.s32.totalorder %v889_v35, 1 }
0x1445   :  { %2127 = vtanh.f32 %v623_v36 }
0x144f   :  { %v2128_v42 = vpop.eup %2127 }
0x1450   :  { %626 = vrot.lane.b32.xlu0 %v2128_v42, %s2202_s0 }
0x14c2   :  { %v627_v43 = vpop.permute.xlu0 %626 }
0x14c3   :  { %v629_v44 = vmul.f32 %v2126_v31, %v627_v43 }
0x14c5   :  { %v631_v45 = vpack.c.bf16 %v629_v44, %v629_v44 }
0x14c7   :  { %633 = vrot.lane.b32.xlu1 %v631_v45, %s2205_s2 }
0x1539   :  { %v634_v46 = vpop.permute.xlu1 %633 }
0x153a   :  { %1731 = vmatmul.mubr.msk.bf16.vlgmr.msra.gmra.mrb[12].mxu1 %vm117_vm1, %v634_v46 }
0x153b   :  { %1938 = vmatprep.mubr.msk.bf16.mxu1 %vm2204_vm0, %v2203_v12  ;;  %1923 = vmatpush3.bf16.msra.mxu1 %v2438_v17 }
0x153c   :  { %1924 = vmatprep.subr.bf16.mxu1 %v2203_v12 }
0x153f   :  { %1925 = vmatpush3.bf16.msra.mxu1 %v2444_v18 }
0x1540   :  { %1926 = vmatprep.subr.bf16.mxu1 %v2203_v12 }
0x1543   :  { %1927 = vmatpush3.bf16.msra.mxu1 %v2451_v19 }
0x1544   :  { %1928 = vmatprep.subr.bf16.mxu1 %v2203_v12 }
0x1547   :  { %1929 = vmatpush3.bf16.msra.mxu1 %v2458_v20 }
0x1548   :  { %1930 = vmatprep.subr.bf16.mxu1 %v2203_v12 }
0x154b   :  { %1931 = vmatpush3.bf16.msra.mxu1 %v2465_v21 }
0x154c   :  { %1932 = vmatprep.subr.bf16.mxu1 %v2203_v12 }
0x154f   :  { %1933 = vmatpush3.bf16.msra.mxu1 %v2472_v22 }
0x1550   :  { %1934 = vmatprep.subr.bf16.mxu1 %v2203_v12 }
0x1553   :  { %1935 = vmatpush3.bf16.msra.mxu1 %v2479_v23 }
0x1554   :  { %1936 = vmatprep.subr.bf16.mxu1 %v2203_v12 }
0x1557   :  { %1937 = vmatpush3.bf16.msra.mxu1 %v2487_v28 }
0x1558   :  { %1070 = vmatprep.subr.bf16.mxu1 %v2371_v37 }
0x160d   :  { %v692_v48 = vpop.f32.mrb[12].mxu1 }
0x160e   :  { %v693_v11 = vpop.f32.mrb[13].mxu1 }
0x160f   :  { %v698_v49 = vadd.f32 %v693_v11, %v630_v47  ;;  %v695_v50 = vpop.f32.mrb[14].mxu1 }
0x1610   :  { %v696_v51 = vpop.f32.mrb[15].mxu1 }
0x1611   :  { %2129 = vtanh.f32 %v698_v49  ;;  %v1732_v52 = vmul.f32 -1.442695, %v698_v49 }
0x1613   :  { %2131 = vpow2.f32 %v1732_v52 }
0x161b   :  { %v2130_v13 = vpop.eup %2129 }
0x161c   :  { %708 = vrot.lane.b32.xlu0 %v2130_v13, %s2202_s0 }
0x161d   :  { %v2132_v53 = vpop.eup %2131 }
0x161e   :  { %v702_v54 = vadd.f32 1.0, %v2132_v53 }
0x1620   :  { %2133 = vrcp.f32 %v702_v54 }
0x162a   :  { %v2134_v55 = vpop.eup %2133 }
0x162b   :  { %v706_v58 = vmul.f32 %v2134_v55, %v623_v36  ;;  %v1747_v36 = vld [vmem:[%s2725_s3 + $0x8] sm:$0xff] }
0x168e   :  { %v709_v56 = vpop.permute.xlu0 %708 }
0x168f   :  { %v711_v57 = vmul.f32 %v2134_v55, %v709_v56 }
0x1691   :  { %713 = vrot.lane.b32.xlu1 %v711_v57, %s2202_s0 }
0x1703   :  { %v714_v59 = vpop.permute.xlu1 %713 }
0x1704   :  { %v2410_v60 = vadd.f32 %v714_v59, %v706_v58 }
0x1706   :  { %2135 = vtanh.f32 %v2410_v60 }
0x1710   :  { %v2136_v61 = vpop.eup %2135 }
0x1711   :  { %719 = vrot.lane.b32.xlu0 %v2136_v61, %s2202_s0 }
0x1783   :  { %v720_v62 = vpop.permute.xlu0 %719 }
0x1784   :  { %v722_v63 = vmul.f32 %v2134_v55, %v720_v62 }
0x1786   :  { %v723_v0 = vpack.c.bf16 %v722_v63, %v722_v63 }
0x1788   :  { %725 = vrot.lane.b32.xlu1 %v723_v0, %s2205_s2 }
0x17fa   :  { %v726_v1 = vpop.permute.xlu1 %725 }
0x17fb   :  { %1733 = vmatmul.mubr.msk.bf16.vlgmr.msra.gmra.mrb[16].mxu0 %vm117_vm1, %v726_v1 }
0x17fc   :  { %925 = vmatpush1.bf16.msra.mxu0 %v2376_v38  ;;  %956 = vmatprep.mubr.bf16.mxu0 %v2206_v40 }
0x17fd   :  { %926 = vmatprep.subr.bf16.mxu0 %v2381_v39 }
0x1800   :  { %927 = vmatpush1.bf16.msra.mxu0 %v2389_v41 }
0x1801   :  { %1942 = vmatprep.subr.bf16.mxu0 %v2203_v12 }
0x18ce   :  { %v764_v3 = vpop.f32.mrb[16].mxu0 }
0x18cf   :  { %v771_v4 = vadd.f32 %v2424_v2, %v764_v3  ;;  %v2427_v5 = vpop.f32.mrb[17].mxu0 }
0x18d0   :  { %v768_v6 = vpop.f32.mrb[18].mxu0 }
0x18d1   :  { %1734 = vst [vmem:[%s2729_s7 + $0x8] sm:$0xff] %v771_v4  ;;  %774 = vmax.xlane.f32.xlu0 %v771_v4  ;;  %v769_v7 = vpop.f32.mrb[19].mxu0 }
0x195e   :  { %v775_v10 = vpop.xlane.xlu0 %774 }
0x195f   :  { %vm776_vm2 = vcmp.eq.f32.partialorder %v771_v4, %v775_v10 }
0x1960   :  { %v777_v14 = vsel %vm776_vm2, %v2432_v9, 128 }
0x1961   :  { %v779_v15 = vshra.s32 %v777_v14, 16  ;;  %v778_v24 = vand.u32 65535, %v777_v14 }
0x1963   :  { %v781_v16 = vcvt.s32.f32 %v779_v15  ;;  %v780_v26 = vcvt.s32.f32 %v778_v24 }
0x1965   :  { %782 = vmin.xlane.f32.xlu1 %v781_v16 }
0x19f2   :  { %v783_v25 = vpop.xlane.xlu1 %782 }
0x19f3   :  { %vm784_vm3 = vcmp.eq.f32.partialorder %v781_v16, %v783_v25  ;;  %v789_v29 = vcvt.f32.s32 %v783_v25 }
0x19f4   :  { %v785_v27 = vsel %vm784_vm3, %v780_v26, inf }
0x19f5   :  { %786 = vmin.xlane.f32.xlu0 %v785_v27  ;;  %v790_v31 = vshll.u32 %v789_v29, 16  ;;  %v1035_v27 = vstv %s1034_s14  ;;  %v1755_v29 = vld [vmem:[%s2725_s3 + $0x10] sm:$0xff]  ;;  %s1618_s14 = scalar_select %p1615_p10, 1, 0 }
0x19f6   :  { %vm1036_vm11 = vcmp.eq.s32.totalorder %v1035_v27, 1 }
0x1a82   :  { %v787_v30 = vpop.xlane.xlu0 %786 }
0x1a83   :  { %v788_v32 = vcvt.f32.s32 %v787_v30 }
0x1a85   :  { %v791_v33 = vadd.s32 %v790_v31, %v788_v32 }
0x1a87   :  { %vm792_vm4 = vcmp.eq.s32.totalorder %v2432_v9, %v791_v33 }
0x1a88   :  { %vm1744_vm5 = vmpackc.low %vm792_vm4, %vm792_vm4 }
0x1a89   :  { %1939 = vmatmul.mubr.msk.bf16.vlgmr.msra.gmra.mrb[16].mxu1 %vm1744_vm5, %v2207_v34 }
0x1a8a   :  { %1071 = vmatpush1.bf16.msra.mxu1 %v2376_v38  ;;  %1102 = vmatprep.mubr.bf16.mxu1 %v2206_v40 }
0x1a8b   :  { %1072 = vmatprep.subr.bf16.mxu1 %v2381_v39 }
0x1a8e   :  { %1073 = vmatpush1.bf16.msra.mxu1 %v2389_v41 }
0x1a8f   :  { %1962 = vmatprep.subr.bf16.mxu1 %v2203_v12 }
0x1b5c   :  { %v878_v42 = vpop.f32.mrb[16].mxu1 }
0x1b5d   :  { %v891_v43 = vsel %vm890_vm6, %v1747_v36, %v878_v42  ;;  %v1940_v44 = vpop.f32.mrb[17].mxu1 }
0x1b5e   :  { %v892_v45 = vadd.f32 %v891_v43, %v2427_v5  ;;  %v881_v46 = vpop.f32.mrb[18].mxu1 }
0x1b5f   :  { %v1941_v47 = vpop.f32.mrb[19].mxu1 }
0x1b60   :  { %2137 = vtanh.f32 %v892_v45  ;;  %v1748_v11 = vmul.f32 -1.442695, %v892_v45 }
0x1b62   :  { %2139 = vpow2.f32 %v1748_v11 }
0x1b6a   :  { %v2138_v48 = vpop.eup %2137 }
0x1b6b   :  { %902 = vrot.lane.b32.xlu0 %v2138_v48, %s2202_s0 }
0x1b6c   :  { %v2140_v49 = vpop.eup %2139 }
0x1b6d   :  { %v896_v50 = vadd.f32 1.0, %v2140_v49 }
0x1b6f   :  { %2141 = vrcp.f32 %v896_v50 }
0x1b79   :  { %v2142_v51 = vpop.eup %2141 }
0x1b7a   :  { %v900_v53 = vmul.f32 %v2142_v51, %v2410_v60 }
0x1bdd   :  { %v903_v13 = vpop.permute.xlu0 %902 }
0x1bde   :  { %v905_v52 = vmul.f32 %v2142_v51, %v903_v13 }
0x1be0   :  { %907 = vrot.lane.b32.xlu1 %v905_v52, %s2202_s0 }
0x1c52   :  { %v908_v54 = vpop.permute.xlu1 %907 }
0x1c53   :  { %v2505_v55 = vadd.f32 %v908_v54, %v900_v53 }
0x1c55   :  { %2143 = vtanh.f32 %v2505_v55 }
0x1c5f   :  { %v2144_v56 = vpop.eup %2143 }
0x1c60   :  { %913 = vrot.lane.b32.xlu1 %v2144_v56, %s2202_s0 }
0x1cd2   :  { %v914_v57 = vpop.permute.xlu1 %913 }
0x1cd3   :  { %v916_v58 = vmul.f32 %v2142_v51, %v914_v57 }
0x1cd5   :  { %v917_v59 = vpack.c.bf16 %v916_v58, %v916_v58 }
0x1cd7   :  { %919 = vrot.lane.b32.xlu0 %v917_v59, %s2205_s2 }
0x1d49   :  { %v920_v61 = vpop.permute.xlu0 %919 }
0x1d4a   :  { %1749 = vmatmul.mubr.msk.bf16.vlgmr.msra.gmra.mrb[20].mxu0 %vm117_vm1, %v920_v61 }
0x1d4b   :  { %1943 = vmatpush3.bf16.msra.mxu0 %v2438_v17  ;;  %1958 = vmatprep.mubr.msk.bf16.mxu0 %vm2204_vm0, %v2203_v12 }
0x1d4c   :  { %1944 = vmatprep.subr.bf16.mxu0 %v2203_v12 }
0x1d4f   :  { %1945 = vmatpush3.bf16.msra.mxu0 %v2444_v18 }
0x1d50   :  { %1946 = vmatprep.subr.bf16.mxu0 %v2203_v12 }
0x1d53   :  { %1947 = vmatpush3.bf16.msra.mxu0 %v2451_v19 }
0x1d54   :  { %1948 = vmatprep.subr.bf16.mxu0 %v2203_v12 }
0x1d57   :  { %1949 = vmatpush3.bf16.msra.mxu0 %v2458_v20 }
0x1d58   :  { %1950 = vmatprep.subr.bf16.mxu0 %v2203_v12 }
0x1d5b   :  { %1951 = vmatpush3.bf16.msra.mxu0 %v2465_v21 }
0x1d5c   :  { %1952 = vmatprep.subr.bf16.mxu0 %v2203_v12 }
0x1d5f   :  { %1953 = vmatpush3.bf16.msra.mxu0 %v2472_v22 }
0x1d60   :  { %1954 = vmatprep.subr.bf16.mxu0 %v2203_v12 }
0x1d63   :  { %1955 = vmatpush3.bf16.msra.mxu0 %v2479_v23 }
0x1d64   :  { %1956 = vmatprep.subr.bf16.mxu0 %v2203_v12 }
0x1d67   :  { %1957 = vmatpush3.bf16.msra.mxu0 %v2487_v28 }
0x1d68   :  { %1216 = vmatprep.subr.bf16.mxu0 %v2371_v37 }
0x1e1d   :  { %v958_v60 = vpop.f32.mrb[20].mxu0 }
0x1e1e   :  { %v965_v62 = vadd.f32 %v2424_v2, %v958_v60  ;;  %v960_v63 = vpop.f32.mrb[21].mxu0 }
0x1e1f   :  { %v962_v0 = vpop.f32.mrb[22].mxu0 }
0x1e20   :  { %1750 = vst [vmem:[%s2729_s7 + $0x10] sm:$0xff] %v965_v62  ;;  %968 = vmax.xlane.f32.xlu1 %v965_v62  ;;  %v963_v1 = vpop.f32.mrb[23].mxu0 }
0x1ead   :  { %v969_v3 = vpop.xlane.xlu1 %968 }
0x1eae   :  { %vm970_vm7 = vcmp.eq.f32.partialorder %v965_v62, %v969_v3 }
0x1eaf   :  { %v971_v4 = vsel %vm970_vm7, %v2432_v9, 128 }
0x1eb0   :  { %v973_v5 = vshra.s32 %v971_v4, 16  ;;  %v972_v7 = vand.u32 65535, %v971_v4 }
0x1eb2   :  { %v975_v6 = vcvt.s32.f32 %v973_v5  ;;  %v974_v10 = vcvt.s32.f32 %v972_v7 }
0x1eb4   :  { %976 = vmin.xlane.f32.xlu0 %v975_v6 }
0x1f41   :  { %v977_v8 = vpop.xlane.xlu0 %976 }
0x1f42   :  { %vm978_vm8 = vcmp.eq.f32.partialorder %v975_v6, %v977_v8  ;;  %v983_v15 = vcvt.f32.s32 %v977_v8 }
0x1f43   :  { %v979_v14 = vsel %vm978_vm8, %v974_v10, inf  ;;  %v2585_v10 = vld [vmem:[%s2729_s7] sm:$0xff] }
0x1f44   :  { %980 = vmin.xlane.f32.xlu0 %v979_v14  ;;  %v984_v24 = vshll.u32 %v983_v15, 16  ;;  %v1181_v14 = vstv %s1180_s22  ;;  %v1763_v15 = vld [vmem:[%s2725_s3 + $0x18] sm:$0xff] }
0x1f45   :  { %vm1182_vm2 = vcmp.eq.s32.totalorder %v1181_v14, 1 }
0x1fd1   :  { %v981_v16 = vpop.xlane.xlu0 %980 }
0x1fd2   :  { %v982_v25 = vcvt.f32.s32 %v981_v16 }
0x1fd4   :  { %v985_v26 = vadd.s32 %v984_v24, %v982_v25 }
0x1fd6   :  { %vm986_vm9 = vcmp.eq.s32.totalorder %v2432_v9, %v985_v26 }
0x1fd7   :  { %vm1752_vm10 = vmpackc.low %vm986_vm9, %vm986_vm9 }
0x1fd8   :  { %1959 = vmatmul.mubr.msk.bf16.vlgmr.msra.gmra.mrb[24].mxu0 %vm1752_vm10, %v2207_v34 }
0x1fd9   :  { %1217 = vmatpush1.bf16.msra.mxu0 %v2376_v38  ;;  %1248 = vmatprep.mubr.bf16.mxu0 %v2206_v40 }
0x1fda   :  { %1218 = vmatprep.subr.bf16.mxu0 %v2381_v39 }
0x1fdd   :  { %1219 = vmatpush1.bf16.msra.mxu0 %v2389_v41 }
0x1fde   :  { %1982 = vmatprep.subr.bf16.mxu0 %v2203_v12 }
0x20ab   :  { %v1024_v30 = vpop.f32.mrb[24].mxu0 }
0x20ac   :  { %v1037_v31 = vsel %vm1036_vm11, %v1755_v29, %v1024_v30  ;;  %v1960_v32 = vpop.f32.mrb[25].mxu0 }
0x20ad   :  { %v1038_v33 = vadd.f32 %v1037_v31, %v960_v63  ;;  %v1027_v35 = vpop.f32.mrb[26].mxu0 }
0x20ae   :  { %v1961_v36 = vpop.f32.mrb[27].mxu0 }
0x20af   :  { %2145 = vtanh.f32 %v1038_v33  ;;  %v1756_v43 = vmul.f32 -1.442695, %v1038_v33 }
0x20b1   :  { %2147 = vpow2.f32 %v1756_v43 }
0x20b9   :  { %v2146_v42 = vpop.eup %2145 }
0x20ba   :  { %1048 = vrot.lane.b32.xlu1 %v2146_v42, %s2202_s0 }
0x20bb   :  { %v2148_v44 = vpop.eup %2147 }
0x20bc   :  { %v1042_v45 = vadd.f32 1.0, %v2148_v44 }
0x20be   :  { %2149 = vrcp.f32 %v1042_v45 }
0x20c8   :  { %v2150_v46 = vpop.eup %2149 }
0x20c9   :  { %v1046_v11 = vmul.f32 %v2150_v46, %v2505_v55 }
0x212c   :  { %v1049_v47 = vpop.permute.xlu1 %1048 }
0x212d   :  { %v1051_v48 = vmul.f32 %v2150_v46, %v1049_v47 }
0x212f   :  { %1053 = vrot.lane.b32.xlu0 %v1051_v48, %s2202_s0 }
0x21a1   :  { %v1054_v49 = vpop.permute.xlu0 %1053 }
0x21a2   :  { %v2547_v50 = vadd.f32 %v1054_v49, %v1046_v11 }
0x21a4   :  { %2151 = vtanh.f32 %v2547_v50 }
0x21ae   :  { %v2152_v51 = vpop.eup %2151 }
0x21af   :  { %1059 = vrot.lane.b32.xlu1 %v2152_v51, %s2202_s0 }
0x2221   :  { %v1060_v13 = vpop.permute.xlu1 %1059 }
0x2222   :  { %v1062_v52 = vmul.f32 %v2150_v46, %v1060_v13 }
0x2224   :  { %v1063_v53 = vpack.c.bf16 %v1062_v52, %v1062_v52 }
0x2226   :  { %1065 = vrot.lane.b32.xlu1 %v1063_v53, %s2205_s2 }
0x2298   :  { %v1066_v54 = vpop.permute.xlu1 %1065 }
0x2299   :  { %1757 = vmatmul.mubr.msk.bf16.vlgmr.msra.gmra.mrb[20].mxu1 %vm117_vm1, %v1066_v54 }
0x229a   :  { %1963 = vmatpush3.bf16.msra.mxu1 %v2438_v17  ;;  %1978 = vmatprep.mubr.msk.bf16.mxu1 %vm2204_vm0, %v2203_v12 }
0x229b   :  { %1964 = vmatprep.subr.bf16.mxu1 %v2203_v12 }
0x229e   :  { %1965 = vmatpush3.bf16.msra.mxu1 %v2444_v18 }
0x229f   :  { %1966 = vmatprep.subr.bf16.mxu1 %v2203_v12 }
0x22a2   :  { %1967 = vmatpush3.bf16.msra.mxu1 %v2451_v19 }
0x22a3   :  { %1968 = vmatprep.subr.bf16.mxu1 %v2203_v12 }
0x22a6   :  { %1969 = vmatpush3.bf16.msra.mxu1 %v2458_v20 }
0x22a7   :  { %1970 = vmatprep.subr.bf16.mxu1 %v2203_v12 }
0x22aa   :  { %1971 = vmatpush3.bf16.msra.mxu1 %v2465_v21 }
0x22ab   :  { %1972 = vmatprep.subr.bf16.mxu1 %v2203_v12 }
0x22ae   :  { %1973 = vmatpush3.bf16.msra.mxu1 %v2472_v22 }
0x22af   :  { %1974 = vmatprep.subr.bf16.mxu1 %v2203_v12 }
0x22b2   :  { %1975 = vmatpush3.bf16.msra.mxu1 %v2479_v23 }
0x22b3   :  { %1976 = vmatprep.subr.bf16.mxu1 %v2203_v12 }
0x22b6   :  { %1977 = vmatpush3.bf16.msra.mxu1 %v2487_v28 }
0x22b7   :  { %1362 = vmatprep.subr.bf16.mxu1 %v2371_v37 }
0x236c   :  { %v1104_v55 = vpop.f32.mrb[20].mxu1 }
0x236d   :  { %v1111_v56 = vadd.f32 %v2424_v2, %v1104_v55  ;;  %v1106_v57 = vpop.f32.mrb[21].mxu1 }
0x236e   :  { %v1108_v58 = vpop.f32.mrb[22].mxu1 }
0x236f   :  { %1758 = vst [vmem:[%s2729_s7 + $0x18] sm:$0xff] %v1111_v56  ;;  %1114 = vmax.xlane.f32.xlu0 %v1111_v56  ;;  %v1109_v59 = vpop.f32.mrb[23].mxu1 }
0x23fc   :  { %v1115_v61 = vpop.xlane.xlu0 %1114 }
0x23fd   :  { %vm1116_vm12 = vcmp.eq.f32.partialorder %v1111_v56, %v1115_v61 }
0x23fe   :  { %v1117_v60 = vsel %vm1116_vm12, %v2432_v9, 128 }
0x23ff   :  { %v1119_v12 = vshra.s32 %v1117_v60, 16  ;;  %v1118_v63 = vand.u32 65535, %v1117_v60 }
0x2401   :  { %v1121_v62 = vcvt.s32.f32 %v1119_v12  ;;  %v1120_v1 = vcvt.s32.f32 %v1118_v63 }
0x2403   :  { %1122 = vmin.xlane.f32.xlu1 %v1121_v62 }
0x2490   :  { %v1123_v0 = vpop.xlane.xlu1 %1122 }
0x2491   :  { %vm1124_vm13 = vcmp.eq.f32.partialorder %v1121_v62, %v1123_v0  ;;  %v1129_v4 = vcvt.f32.s32 %v1123_v0 }
0x2492   :  { %v1125_v3 = vsel %vm1124_vm13, %v1120_v1, inf }
0x2493   :  { %1126 = vmin.xlane.f32.xlu0 %v1125_v3  ;;  %v1130_v6 = vshll.u32 %v1129_v4, 16  ;;  %v1327_v3 = vstv %s1326_s1  ;;  %v1771_v4 = vld [vmem:[%s2725_s3 + $0x20] sm:$0xff] }
0x2494   :  { %vm1328_vm7 = vcmp.eq.s32.totalorder %v1327_v3, 1 }
0x2520   :  { %v1127_v5 = vpop.xlane.xlu0 %1126 }
0x2521   :  { %v1128_v7 = vcvt.f32.s32 %v1127_v5 }
0x2523   :  { %v1131_v8 = vadd.s32 %v1130_v6, %v1128_v7 }
0x2525   :  { %vm1132_vm14 = vcmp.eq.s32.totalorder %v2432_v9, %v1131_v8 }
0x2526   :  { %vm1760_vm15 = vmpackc.low %vm1132_vm14, %vm1132_vm14 }
0x2527   :  { %1979 = vmatmul.mubr.msk.bf16.vlgmr.msra.gmra.mrb[24].mxu1 %vm1760_vm15, %v2207_v34 }
0x2528   :  { %1363 = vmatpush1.bf16.msra.mxu1 %v2376_v38  ;;  %1394 = vmatprep.mubr.bf16.mxu1 %v2206_v40 }
0x2529   :  { %1364 = vmatprep.subr.bf16.mxu1 %v2381_v39 }
0x252c   :  { %1365 = vmatpush1.bf16.msra.mxu1 %v2389_v41 }
0x252d   :  { %2002 = vmatprep.subr.bf16.mxu1 %v2585_v10 }
0x25fa   :  { %v1170_v16 = vpop.f32.mrb[24].mxu1 }
0x25fb   :  { %v1183_v24 = vsel %vm1182_vm2, %v1763_v15, %v1170_v16  ;;  %v1980_v25 = vpop.f32.mrb[25].mxu1 }
0x25fc   :  { %v1184_v26 = vadd.f32 %v1183_v24, %v1106_v57  ;;  %v1173_v27 = vpop.f32.mrb[26].mxu1 }
0x25fd   :  { %v1981_v29 = vpop.f32.mrb[27].mxu1 }
0x25fe   :  { %2153 = vtanh.f32 %v1184_v26  ;;  %v1764_v31 = vmul.f32 -1.442695, %v1184_v26 }
0x2600   :  { %2155 = vpow2.f32 %v1764_v31 }
0x2608   :  { %v2154_v30 = vpop.eup %2153 }
0x2609   :  { %1194 = vrot.lane.b32.xlu0 %v2154_v30, %s2202_s0 }
0x260a   :  { %v2156_v32 = vpop.eup %2155 }
0x260b   :  { %v1188_v33 = vadd.f32 1.0, %v2156_v32 }
0x260d   :  { %2157 = vrcp.f32 %v1188_v33 }
0x2617   :  { %v2158_v35 = vpop.eup %2157 }
0x2618   :  { %v1192_v43 = vmul.f32 %v2158_v35, %v2547_v50 }
0x267b   :  { %v1195_v36 = vpop.permute.xlu0 %1194 }
0x267c   :  { %v1197_v42 = vmul.f32 %v2158_v35, %v1195_v36 }
0x267e   :  { %1199 = vrot.lane.b32.xlu1 %v1197_v42, %s2202_s0 }
0x26f0   :  { %v1200_v44 = vpop.permute.xlu1 %1199 }
0x26f1   :  { %v2594_v45 = vadd.f32 %v1200_v44, %v1192_v43 }
0x26f3   :  { %2159 = vtanh.f32 %v2594_v45 }
0x26fd   :  { %v2160_v46 = vpop.eup %2159 }
0x26fe   :  { %1205 = vrot.lane.b32.xlu1 %v2160_v46, %s2202_s0 }
0x2770   :  { %v1206_v47 = vpop.permute.xlu1 %1205 }
0x2771   :  { %v1208_v48 = vmul.f32 %v2158_v35, %v1206_v47 }
0x2773   :  { %v1209_v11 = vpack.c.bf16 %v1208_v48, %v1208_v48 }
0x2775   :  { %1211 = vrot.lane.b32.xlu0 %v1209_v11, %s2205_s2 }
0x27e7   :  { %v1212_v49 = vpop.permute.xlu0 %1211 }
0x27e8   :  { %1765 = vmatmul.mubr.msk.bf16.vlgmr.msra.gmra.mrb[28].mxu0 %vm117_vm1, %v1212_v49 }
0x27e9   :  { %1983 = vmatpush3.bf16.msra.mxu0 %v2438_v17  ;;  %1998 = vmatprep.mubr.msk.bf16.mxu0 %vm2204_vm0, %v2585_v10 }
0x27ea   :  { %1984 = vmatprep.subr.bf16.mxu0 %v2585_v10 }
0x27ed   :  { %1985 = vmatpush3.bf16.msra.mxu0 %v2444_v18 }
0x27ee   :  { %1986 = vmatprep.subr.bf16.mxu0 %v2585_v10 }
0x27f1   :  { %1987 = vmatpush3.bf16.msra.mxu0 %v2451_v19 }
0x27f2   :  { %1988 = vmatprep.subr.bf16.mxu0 %v2585_v10 }
0x27f5   :  { %1989 = vmatpush3.bf16.msra.mxu0 %v2458_v20 }
0x27f6   :  { %1990 = vmatprep.subr.bf16.mxu0 %v2585_v10 }
0x27f9   :  { %1991 = vmatpush3.bf16.msra.mxu0 %v2465_v21 }
0x27fa   :  { %1992 = vmatprep.subr.bf16.mxu0 %v2585_v10 }
0x27fd   :  { %1993 = vmatpush3.bf16.msra.mxu0 %v2472_v22 }
0x27fe   :  { %1994 = vmatprep.subr.bf16.mxu0 %v2585_v10 }
0x2801   :  { %1995 = vmatpush3.bf16.msra.mxu0 %v2479_v23 }
0x2802   :  { %1996 = vmatprep.subr.bf16.mxu0 %v2585_v10 }
0x2805   :  { %1997 = vmatpush3.bf16.msra.mxu0 %v2487_v28 }
0x2806   :  { %1508 = vmatprep.subr.bf16.mxu0 %v2371_v37 }
0x28bb   :  { %v1250_v50 = vpop.f32.mrb[28].mxu0 }
0x28bc   :  { %v1257_v51 = vadd.f32 %v2424_v2, %v1250_v50  ;;  %v1252_v13 = vpop.f32.mrb[29].mxu0 }
0x28bd   :  { %v1254_v52 = vpop.f32.mrb[30].mxu0 }
0x28be   :  { %1766 = vst [vmem:[%s2729_s7 + $0x20] sm:$0xff] %v1257_v51  ;;  %1260 = vmax.xlane.f32.xlu1 %v1257_v51  ;;  %v1255_v53 = vpop.f32.mrb[31].mxu0 }
0x294b   :  { %v1261_v54 = vpop.xlane.xlu1 %1260 }
0x294c   :  { %vm1262_vm3 = vcmp.eq.f32.partialorder %v1257_v51, %v1261_v54 }
0x294d   :  { %v1263_v55 = vsel %vm1262_vm3, %v2432_v9, 128 }
0x294e   :  { %v1265_v56 = vshra.s32 %v1263_v55, 16  ;;  %v1264_v58 = vand.u32 65535, %v1263_v55 }
0x2950   :  { %v1267_v57 = vcvt.s32.f32 %v1265_v56  ;;  %v1266_v61 = vcvt.s32.f32 %v1264_v58 }
0x2952   :  { %1268 = vmin.xlane.f32.xlu0 %v1267_v57 }
0x29df   :  { %v1269_v59 = vpop.xlane.xlu0 %1268 }
0x29e0   :  { %vm1270_vm4 = vcmp.eq.f32.partialorder %v1267_v57, %v1269_v59  ;;  %v1275_v12 = vcvt.f32.s32 %v1269_v59 }
0x29e1   :  { %v1271_v60 = vsel %vm1270_vm4, %v1266_v61, inf  ;;  %v1473_v61 = vstv %s1472_s9 }
0x29e2   :  { %1272 = vmin.xlane.f32.xlu0 %v1271_v60  ;;  %v1276_v63 = vshll.u32 %v1275_v12, 16  ;;  %v1779_v60 = vld [vmem:[%s2725_s3 + $0x28] sm:$0xff]  ;;  %vm1474_vm12 = vcmp.eq.s32.totalorder %v1473_v61, 1 }
0x2a6f   :  { %v1273_v62 = vpop.xlane.xlu0 %1272 }
0x2a70   :  { %v1274_v0 = vcvt.f32.s32 %v1273_v62 }
0x2a72   :  { %v1277_v1 = vadd.s32 %v1276_v63, %v1274_v0 }
0x2a74   :  { %vm1278_vm5 = vcmp.eq.s32.totalorder %v2432_v9, %v1277_v1 }
0x2a75   :  { %vm1768_vm6 = vmpackc.low %vm1278_vm5, %vm1278_vm5 }
0x2a76   :  { %1999 = vmatmul.mubr.msk.bf16.vlgmr.msra.gmra.mrb[32].mxu0 %vm1768_vm6, %v2207_v34 }
0x2a77   :  { %1509 = vmatpush1.bf16.msra.mxu0 %v2376_v38  ;;  %1540 = vmatprep.mubr.bf16.mxu0 %v2206_v40 }
0x2a78   :  { %1510 = vmatprep.subr.bf16.mxu0 %v2381_v39 }
0x2a7b   :  { %1511 = vmatpush1.bf16.msra.mxu0 %v2389_v41 }
0x2a7c   :  { %2022 = vmatprep.subr.bf16.mxu0 %v2585_v10 }
0x2b49   :  { %v1316_v5 = vpop.f32.mrb[32].mxu0 }
0x2b4a   :  { %v1329_v6 = vsel %vm1328_vm7, %v1771_v4, %v1316_v5  ;;  %v2000_v7 = vpop.f32.mrb[33].mxu0 }
0x2b4b   :  { %v1330_v8 = vadd.f32 %v1329_v6, %v1252_v13  ;;  %v1319_v14 = vpop.f32.mrb[34].mxu0 }
0x2b4c   :  { %v2001_v15 = vpop.f32.mrb[35].mxu0 }
0x2b4d   :  { %2161 = vtanh.f32 %v1330_v8  ;;  %v1772_v24 = vmul.f32 -1.442695, %v1330_v8 }
0x2b4f   :  { %2163 = vpow2.f32 %v1772_v24 }
0x2b57   :  { %v2162_v16 = vpop.eup %2161 }
0x2b58   :  { %1340 = vrot.lane.b32.xlu1 %v2162_v16, %s2202_s0 }
0x2b59   :  { %v2164_v25 = vpop.eup %2163 }
0x2b5a   :  { %v1334_v26 = vadd.f32 1.0, %v2164_v25 }
0x2b5c   :  { %2165 = vrcp.f32 %v1334_v26 }
0x2b66   :  { %v2166_v27 = vpop.eup %2165 }
0x2b67   :  { %v1338_v31 = vmul.f32 %v2166_v27, %v2594_v45 }
0x2bca   :  { %v1341_v29 = vpop.permute.xlu1 %1340 }
0x2bcb   :  { %v1343_v30 = vmul.f32 %v2166_v27, %v1341_v29 }
0x2bcd   :  { %1345 = vrot.lane.b32.xlu0 %v1343_v30, %s2202_s0 }
0x2c3f   :  { %v1346_v32 = vpop.permute.xlu0 %1345 }
0x2c40   :  { %v2636_v33 = vadd.f32 %v1346_v32, %v1338_v31 }
0x2c42   :  { %2167 = vtanh.f32 %v2636_v33 }
0x2c4c   :  { %v2168_v35 = vpop.eup %2167 }
0x2c4d   :  { %1351 = vrot.lane.b32.xlu1 %v2168_v35, %s2202_s0 }
0x2cbf   :  { %v1352_v36 = vpop.permute.xlu1 %1351 }
0x2cc0   :  { %v1354_v42 = vmul.f32 %v2166_v27, %v1352_v36 }
0x2cc2   :  { %v1355_v43 = vpack.c.bf16 %v1354_v42, %v1354_v42  ;;  %v1619_v42 = vstv %s1618_s14 }
0x2cc3   :  { %vm1620_vm2 = vcmp.eq.s32.totalorder %v1619_v42, 1 }
0x2cc4   :  { %1357 = vrot.lane.b32.xlu1 %v1355_v43, %s2205_s2  ;;  %v1787_v43 = vld [vmem:[%s2725_s3 + $0x30] sm:$0xff] }
0x2d36   :  { %v1358_v44 = vpop.permute.xlu1 %1357 }
0x2d37   :  { %1773 = vmatmul.mubr.msk.bf16.vlgmr.msra.gmra.mrb[28].mxu1 %vm117_vm1, %v1358_v44 }
0x2d38   :  { %2003 = vmatpush3.bf16.msra.mxu1 %v2438_v17  ;;  %2018 = vmatprep.mubr.msk.bf16.mxu1 %vm2204_vm0, %v2585_v10 }
0x2d39   :  { %2004 = vmatprep.subr.bf16.mxu1 %v2585_v10 }
0x2d3c   :  { %2005 = vmatpush3.bf16.msra.mxu1 %v2444_v18 }
0x2d3d   :  { %2006 = vmatprep.subr.bf16.mxu1 %v2585_v10 }
0x2d40   :  { %2007 = vmatpush3.bf16.msra.mxu1 %v2451_v19 }
0x2d41   :  { %2008 = vmatprep.subr.bf16.mxu1 %v2585_v10 }
0x2d44   :  { %2009 = vmatpush3.bf16.msra.mxu1 %v2458_v20 }
0x2d45   :  { %2010 = vmatprep.subr.bf16.mxu1 %v2585_v10 }
0x2d48   :  { %2011 = vmatpush3.bf16.msra.mxu1 %v2465_v21 }
0x2d49   :  { %2012 = vmatprep.subr.bf16.mxu1 %v2585_v10 }
0x2d4c   :  { %2013 = vmatpush3.bf16.msra.mxu1 %v2472_v22 }
0x2d4d   :  { %2014 = vmatprep.subr.bf16.mxu1 %v2585_v10 }
0x2d50   :  { %2015 = vmatpush3.bf16.msra.mxu1 %v2479_v23 }
0x2d51   :  { %2016 = vmatprep.subr.bf16.mxu1 %v2585_v10 }
0x2d54   :  { %2017 = vmatpush3.bf16.msra.mxu1 %v2487_v28 }
0x2d55   :  { %1654 = vmatprep.subr.bf16.mxu1 %v2371_v37 }
0x2e0a   :  { %v1396_v45 = vpop.f32.mrb[28].mxu1 }
0x2e0b   :  { %v1403_v46 = vadd.f32 %v2424_v2, %v1396_v45  ;;  %v1398_v47 = vpop.f32.mrb[29].mxu1 }
0x2e0c   :  { %v1400_v48 = vpop.f32.mrb[30].mxu1 }
0x2e0d   :  { %1774 = vst [vmem:[%s2729_s7 + $0x28] sm:$0xff] %v1403_v46  ;;  %1406 = vmax.xlane.f32.xlu0 %v1403_v46  ;;  %v1401_v11 = vpop.f32.mrb[31].mxu1 }
0x2e9a   :  { %v1407_v49 = vpop.xlane.xlu0 %1406 }
0x2e9b   :  { %vm1408_vm8 = vcmp.eq.f32.partialorder %v1403_v46, %v1407_v49 }
0x2e9c   :  { %v1409_v50 = vsel %vm1408_vm8, %v2432_v9, 128 }
0x2e9d   :  { %v1411_v51 = vshra.s32 %v1409_v50, 16  ;;  %v1410_v52 = vand.u32 65535, %v1409_v50 }
0x2e9f   :  { %v1413_v13 = vcvt.s32.f32 %v1411_v51  ;;  %v1412_v53 = vcvt.s32.f32 %v1410_v52 }
0x2ea1   :  { %1414 = vmin.xlane.f32.xlu1 %v1413_v13 }
0x2f2e   :  { %v1415_v37 = vpop.xlane.xlu1 %1414 }
0x2f2f   :  { %vm1416_vm9 = vcmp.eq.f32.partialorder %v1413_v13, %v1415_v37  ;;  %v1421_v55 = vcvt.f32.s32 %v1415_v37 }
0x2f30   :  { %v1417_v54 = vsel %vm1416_vm9, %v1412_v53, inf }
0x2f31   :  { %1418 = vmin.xlane.f32.xlu0 %v1417_v54  ;;  %v1422_v57 = vshll.u32 %v1421_v55, 16 }
0x2fbe   :  { %v1419_v56 = vpop.xlane.xlu0 %1418 }
0x2fbf   :  { %v1420_v58 = vcvt.f32.s32 %v1419_v56 }
0x2fc1   :  { %v1423_v59 = vadd.s32 %v1422_v57, %v1420_v58 }
0x2fc3   :  { %vm1424_vm10 = vcmp.eq.s32.totalorder %v2432_v9, %v1423_v59 }
0x2fc4   :  { %vm1776_vm11 = vmpackc.low %vm1424_vm10, %vm1424_vm10 }
0x2fc5   :  { %2019 = vmatmul.mubr.msk.bf16.vlgmr.msra.gmra.mrb[32].mxu1 %vm1776_vm11, %v2207_v34 }
0x2fc6   :  { %1655 = vmatpush1.bf16.msra.mxu1 %v2376_v38  ;;  %1686 = vmatprep.mubr.bf16.mxu1 %v2206_v40 }
0x2fc7   :  { %1656 = vmatprep.subr.bf16.mxu1 %v2381_v39 }
0x2fca   :  { %1657 = vmatpush1.bf16.msra.mxu1 %v2389_v41 }
0x3098   :  { %v1462_v12 = vpop.f32.mrb[32].mxu1 }
0x3099   :  { %v1475_v62 = vsel %vm1474_vm12, %v1779_v60, %v1462_v12  ;;  %v2020_v63 = vpop.f32.mrb[33].mxu1  ;;  %v2186_v60 = vld [vmem:[%s2728_s6] ss:$0 sm:$0xff] }
0x309a   :  { %v1476_v0 = vadd.f32 %v1475_v62, %v1398_v47  ;;  %v1465_v38 = vpop.f32.mrb[34].mxu1 }
0x309b   :  { %v2021_v1 = vpop.f32.mrb[35].mxu1 }
0x309c   :  { %2169 = vtanh.f32 %v1476_v0  ;;  %v1780_v39 = vmul.f32 -1.442695, %v1476_v0 }
0x309e   :  { %2171 = vpow2.f32 %v1780_v39 }
0x30a6   :  { %v2170_v40 = vpop.eup %2169 }
0x30a7   :  { %1486 = vrot.lane.b32.xlu0 %v2170_v40, %s2202_s0 }
0x30a8   :  { %v2172_v41 = vpop.eup %2171 }
0x30a9   :  { %v1480_v3 = vadd.f32 1.0, %v2172_v41 }
0x30ab   :  { %2173 = vrcp.f32 %v1480_v3 }
0x30b5   :  { %v2174_v4 = vpop.eup %2173 }
0x30b6   :  { %v1484_v7 = vmul.f32 %v2174_v4, %v2636_v33 }
0x3119   :  { %v1487_v5 = vpop.permute.xlu0 %1486 }
0x311a   :  { %v1489_v6 = vmul.f32 %v2174_v4, %v1487_v5 }
0x311c   :  { %1491 = vrot.lane.b32.xlu1 %v1489_v6, %s2202_s0 }
0x318e   :  { %v1492_v8 = vpop.permute.xlu1 %1491 }
0x318f   :  { %v2677_v14 = vadd.f32 %v1492_v8, %v1484_v7 }
0x3191   :  { %2175 = vtanh.f32 %v2677_v14 }
0x319b   :  { %v2176_v15 = vpop.eup %2175 }
0x319c   :  { %1497 = vrot.lane.b32.xlu1 %v2176_v15, %s2202_s0 }
0x320e   :  { %v1498_v16 = vpop.permute.xlu1 %1497 }
0x320f   :  { %v1500_v24 = vmul.f32 %v2174_v4, %v1498_v16 }
0x3211   :  { %v1501_v25 = vpack.c.bf16 %v1500_v24, %v1500_v24 }
0x3213   :  { %1503 = vrot.lane.b32.xlu0 %v1501_v25, %s2205_s2 }
0x3285   :  { %v1504_v26 = vpop.permute.xlu0 %1503 }
0x3286   :  { %1781 = vmatmul.mubr.msk.bf16.vlgmr.msra.gmra.mrb[36].mxu0 %vm117_vm1, %v1504_v26 }
0x3287   :  { %2023 = vmatpush3.bf16.msra.mxu0 %v2438_v17  ;;  %2038 = vmatprep.mubr.msk.bf16.mxu0 %vm2204_vm0, %v2585_v10 }
0x3288   :  { %2024 = vmatprep.subr.bf16.mxu0 %v2585_v10 }
0x328b   :  { %2025 = vmatpush3.bf16.msra.mxu0 %v2444_v18 }
0x328c   :  { %2026 = vmatprep.subr.bf16.mxu0 %v2585_v10 }
0x328f   :  { %2027 = vmatpush3.bf16.msra.mxu0 %v2451_v19 }
0x3290   :  { %2028 = vmatprep.subr.bf16.mxu0 %v2585_v10 }
0x3293   :  { %2029 = vmatpush3.bf16.msra.mxu0 %v2458_v20 }
0x3294   :  { %2030 = vmatprep.subr.bf16.mxu0 %v2585_v10 }
0x3297   :  { %2031 = vmatpush3.bf16.msra.mxu0 %v2465_v21 }
0x3298   :  { %2032 = vmatprep.subr.bf16.mxu0 %v2585_v10 }
0x329b   :  { %2033 = vmatpush3.bf16.msra.mxu0 %v2472_v22 }
0x329c   :  { %2034 = vmatprep.subr.bf16.mxu0 %v2585_v10 }
0x329f   :  { %2035 = vmatpush3.bf16.msra.mxu0 %v2479_v23 }
0x32a0   :  { %2036 = vmatprep.subr.bf16.mxu0 %v2585_v10 }
0x32a3   :  { %2037 = vmatpush3.bf16.msra.mxu0 %v2487_v28 }
0x3359   :  { %v1542_v17 = vpop.f32.mrb[36].mxu0 }
0x335a   :  { %v1549_v18 = vadd.f32 %v2424_v2, %v1542_v17  ;;  %v1544_v19 = vpop.f32.mrb[37].mxu0 }
0x335b   :  { %v1546_v20 = vpop.f32.mrb[38].mxu0 }
0x335c   :  { %1782 = vst [vmem:[%s2729_s7 + $0x30] sm:$0xff] %v1549_v18  ;;  %1552 = vmax.xlane.f32.xlu1 %v1549_v18  ;;  %v1547_v21 = vpop.f32.mrb[39].mxu0 }
0x33e9   :  { %v1553_v22 = vpop.xlane.xlu1 %1552 }
0x33ea   :  { %vm1554_vm0 = vcmp.eq.f32.partialorder %v1549_v18, %v1553_v22 }
0x33eb   :  { %v1555_v27 = vsel %vm1554_vm0, %v2432_v9, 128 }
0x33ec   :  { %v1557_v23 = vshra.s32 %v1555_v27, 16  ;;  %v1556_v10 = vand.u32 65535, %v1555_v27 }
0x33ee   :  { %v1559_v29 = vcvt.s32.f32 %v1557_v23  ;;  %v1558_v30 = vcvt.s32.f32 %v1556_v10 }
0x33f0   :  { %1560 = vmin.xlane.f32.xlu0 %v1559_v29 }
0x347d   :  { %v1561_v28 = vpop.xlane.xlu0 %1560 }
0x347e   :  { %vm1562_vm13 = vcmp.eq.f32.partialorder %v1559_v29, %v1561_v28  ;;  %v1567_v31 = vcvt.f32.s32 %v1561_v28 }
0x347f   :  { %v1563_v2 = vsel %vm1562_vm13, %v1558_v30, inf }
0x3480   :  { %1564 = vmin.xlane.f32.xlu0 %v1563_v2  ;;  %v1568_v33 = vshll.u32 %v1567_v31, 16 }
0x350d   :  { %v1565_v32 = vpop.xlane.xlu0 %1564 }
0x350e   :  { %v1566_v35 = vcvt.f32.s32 %v1565_v32 }
0x3510   :  { %v1569_v36 = vadd.s32 %v1568_v33, %v1566_v35 }
0x3512   :  { %vm1570_vm14 = vcmp.eq.s32.totalorder %v2432_v9, %v1569_v36 }
0x3513   :  { %vm1784_vm15 = vmpackc.low %vm1570_vm14, %vm1570_vm14 }
0x3514   :  { %2039 = vmatmul.mubr.msk.bf16.vlgmr.msra.gmra.mrb[40].mxu0 %vm1784_vm15, %v2207_v34 }
0x35e7   :  { %v1608_v44 = vpop.f32.mrb[40].mxu0 }
0x35e8   :  { %v1621_v45 = vsel %vm1620_vm2, %v1787_v43, %v1608_v44  ;;  %v2040_v46 = vpop.f32.mrb[41].mxu0 }
0x35e9   :  { %v1622_v47 = vadd.f32 %v1621_v45, %v1544_v19  ;;  %v1611_v48 = vpop.f32.mrb[42].mxu0 }
0x35ea   :  { %v2041_v11 = vpop.f32.mrb[43].mxu0 }
0x35eb   :  { %2177 = vtanh.f32 %v1622_v47  ;;  %v1788_v34 = vmul.f32 -1.442695, %v1622_v47 }
0x35ed   :  { %2179 = vpow2.f32 %v1788_v34 }
0x35f5   :  { %v2178_v9 = vpop.eup %2177 }
0x35f6   :  { %1632 = vrot.lane.b32.xlu1 %v2178_v9, %s2202_s0 }
0x35f7   :  { %v2180_v49 = vpop.eup %2179 }
0x35f8   :  { %v1626_v50 = vadd.f32 1.0, %v2180_v49 }
0x35fa   :  { %2181 = vrcp.f32 %v1626_v50 }
0x3604   :  { %v2182_v51 = vpop.eup %2181 }
0x3605   :  { %v1630_v37 = vmul.f32 %v2182_v51, %v2677_v14 }
0x3668   :  { %v1633_v13 = vpop.permute.xlu1 %1632 }
0x3669   :  { %v1635_v52 = vmul.f32 %v2182_v51, %v1633_v13 }
0x366b   :  { %1637 = vrot.lane.b32.xlu0 %v1635_v52, %s2202_s0 }
0x36dd   :  { %v1638_v53 = vpop.permute.xlu0 %1637 }
0x36de   :  { %v1640_v54 = vadd.f32 %v1638_v53, %v1630_v37 }
0x36e0   :  { %2183 = vtanh.f32 %v1640_v54 }
0x36ea   :  { %v2184_v55 = vpop.eup %2183 }
0x36eb   :  { %1643 = vrot.lane.b32.xlu1 %v2184_v55, %s2202_s0 }
0x375d   :  { %v1644_v56 = vpop.permute.xlu1 %1643 }
0x375e   :  { %v1646_v57 = vmul.f32 %v2182_v51, %v1644_v56 }
0x3760   :  { %v1647_v58 = vpack.c.bf16 %v1646_v57, %v1646_v57 }
0x3762   :  { %1649 = vrot.lane.b32.xlu1 %v1647_v58, %s2205_s2 }
0x37d4   :  { %v1650_v59 = vpop.permute.xlu1 %1649 }
0x37d5   :  { %1789 = vmatmul.mubr.msk.bf16.vlgmr.msra.gmra.mrb[36].mxu1 %vm117_vm1, %v1650_v59 }
0x38a8   :  { %v1688_v61 = vpop.f32.mrb[36].mxu1 }
0x38a9   :  { %v1694_v12 = vadd.f32 %v2186_v60, %v1688_v61  ;;  %v1690_v62 = vpop.f32.mrb[37].mxu1 }
0x38aa   :  { %v1691_v63 = vpop.f32.mrb[38].mxu1 }
0x38ab   :  { %1790 = vst [vmem:[%s2729_s7 + $0x38] sm:$0xff] %v1694_v12  ;;  %v1692_v0 = vpop.f32.mrb[39].mxu1 }
0x38ac   :  { %1701 = vsyncpa [#allocation3], 1 }

</bundles_post_ra>
